<compile_context>
chip_gen: v5e
topology: v5e:2x2
jax: 0.10.0
libtpu: 0.0.40
codegen_flags: <defaults>
</compile_context>

<pallas_src>
import jax
import jax.numpy as jnp
from jax.experimental import pallas as pl
from jax.experimental.pallas import tpu as pltpu


def _round_up(n, m):
    return (n + m - 1) // m * m


def _softplus(x):
    # PyTorch nn.Softplus(beta=1, threshold=20): x when x > 20 else log1p(exp(x)).
    # TODO(synk): on v6e/v7x the exp could run in bf16 (EUP has bf16 there) if profiling
    # shows the kernel EUP-bound at small D; keep f32 for v5e and strict parity.
    sp = jnp.maximum(x, 0.0) + jnp.log1p(jnp.exp(-jnp.abs(x)))
    return jnp.where(x > 20.0, x, sp)


def _mlp_kernel(x_ref, w1_ref, b1_ref, w2_ref, b2_ref, w3_ref, b3_ref,
                w4_ref, b4_ref, o_ref):
    f32 = jnp.float32

    # x tile: (tile_b, D_pad), already in the matmul dtype (bf16 by default).
    h = jnp.dot(x_ref[...], w1_ref[...], preferred_element_type=f32) + b1_ref[...]
    h = _softplus(h)
    h = jnp.dot(h.astype(w2_ref.dtype), w2_ref[...],
                preferred_element_type=f32) + b2_ref[...]
    h = _softplus(h)
    h = jnp.dot(h.astype(w3_ref.dtype), w3_ref[...],
                preferred_element_type=f32) + b3_ref[...]
    h = _softplus(h)

    # Final Linear(D, 1): w4 (1, D_pad) @ h.T (D_pad, tile_b) -> lane-dense (1, tile_b)
    # row (full-width unmasked stores). h is cast to the matmul dtype BEFORE the
    # transpose so the XLU/VMEM transpose traffic is halved.
    # TODO(synk): A/B the no-transpose variant (h @ w4.T -> (tile_b, 1) column) at large
    # D; the lane-sparse store penalty is tiny and it drops the transpose entirely.
    row = jnp.dot(w4_ref[...], h.astype(w4_ref.dtype).T,
                  preferred_element_type=f32) + b4_ref[...]
    o_ref[...] = row.astype(o_ref.dtype)


def _pick_tile_b(B, D_pad):
    """Batch tile: multiple of 128, ~2 MiB of x per tile, and >= 2 tiles when the batch
    allows it so the 'parallel' grid axis can span both v7x TensorCores."""
    B_ceil = _round_up(max(B, 1), 128)
    t = (2 * 1024 * 1024) // (D_pad * 2)            # rows per ~2 MiB of bf16 x
    t = max(128, min(4096, (t // 128) * 128))
    if D_pad >= 2048:                                # v7x 64 MiB VMEM headroom at large D
        t = min(t, 256)
    t = min(t, B_ceil)
    if B_ceil > 128 and t >= B_ceil:                 # force num_tiles >= 2 (megacore)
        t = max(128, _round_up(B_ceil // 2, 128))
    return t


def mlp_regression_forward(x, params, *, tile_b=None, vmem_limit_bytes=None,
                           use_bf16=True):
    """x: (B, D) float32. params: PyTorch-shaped weights/biases (nn.Linear convention)."""
    B, D = x.shape
    f32 = jnp.float32
    wdt = jnp.bfloat16 if use_bf16 else jnp.float32
    wsz = jnp.dtype(wdt).itemsize

    # Keep the 128 pad (do NOT pad to the 256-wide MXU on v6e/v7x): growing tile_b is
    # free, growing D_pad**2 FLOPs is not.
    D_pad = _round_up(max(D, 128), 128)
    if tile_b is None:
        tile_b = _pick_tile_b(B, D_pad)
    assert tile_b % 128 == 0, "tile_b must be a multiple of 128"
    B_pad = _round_up(B, tile_b)
    num_tiles = B_pad // tile_b

    def pad2(a, rows, cols):
        return jnp.pad(a, ((0, rows - a.shape[0]), (0, cols - a.shape[1])))

    # Glue: nn.Linear stores W as (out, in); pre-transpose to (in, out), zero-pad to
    # D_pad, cast to the matmul dtype (f32 accumulation inside the kernel).
    # Padding invariant: padded activation columns are NOT zero after layer 1
    # (softplus(0) = ln 2), but the zero-padded *rows* of w2/w3/w4 annihilate them, so
    # real outputs are exact w.r.t. padding. Weight-row padding must stay zero.
    x_p = pad2(x.astype(f32), B_pad, D_pad).astype(wdt)

    w1 = pad2(params["w1"].T.astype(f32), D_pad, D_pad).astype(wdt)
    w2 = pad2(params["w2"].T.astype(f32), D_pad, D_pad).astype(wdt)
    w3 = pad2(params["w3"].T.astype(f32), D_pad, D_pad).astype(wdt)
    b1 = pad2(params["b1"].reshape(1, -1).astype(f32), 1, D_pad)
    b2 = pad2(params["b2"].reshape(1, -1).astype(f32), 1, D_pad)
    b3 = pad2(params["b3"].reshape(1, -1).astype(f32), 1, D_pad)
    w4 = pad2(params["w4"].reshape(1, -1).astype(f32), 1, D_pad).astype(wdt)
    b4 = params["b4"].reshape(1, 1).astype(f32)

    # Grid-invariant blocks: constant index_map + single buffer (no DMA after step 0,
    # so double-buffering would only waste VMEM).
    rep = lambda shape: pl.BlockSpec(shape, lambda i: (0, 0),
                                     pipeline_mode=pl.Buffered(1))

    # VMEM budget (rough upper bound): single-buffered weights, double-buffered x tiles
    # and output rows, plus f32 intermediates / bf16 transpose copies.
    vmem_estimate = (3 * D_pad * D_pad * wsz + 3 * D_pad * 4 + D_pad * wsz + 4  # weights
                     + 2 * tile_b * D_pad * wsz                                  # x (2 bufs)
                     + 2 * tile_b * 4                                            # out (2 bufs)
                     + 6 * tile_b * D_pad * 4)                                   # intermediates
    if vmem_limit_bytes is None and vmem_estimate > (12 << 20):
        # Only override the default scoped limit (16 MiB on v5e) for large configs;
        # cap at v7x's 64 MiB physical VMEM.
        vmem_limit_bytes = min(int(vmem_estimate * 3 // 2) + (4 << 20), 64 << 20)

    cost = pl.CostEstimate(
        flops=2 * B_pad * D_pad * (3 * D_pad + 1),
        transcendentals=6 * B_pad * D_pad,                       # exp + log1p, 3 layers
        bytes_accessed=(B_pad * D_pad * wsz + 3 * D_pad * D_pad * wsz
                        + 3 * D_pad * 4 + D_pad * wsz + 4 + B_pad * 4))

    out = pl.pallas_call(
        _mlp_kernel,
        out_shape=jax.ShapeDtypeStruct((1, B_pad), f32),
        grid_spec=pltpu.PrefetchScalarGridSpec(
            num_scalar_prefetch=0,
            grid=(num_tiles,),
            in_specs=[
                pl.BlockSpec((tile_b, D_pad), lambda i: (i, 0)),   # x tile (pipelined)
                rep((D_pad, D_pad)), rep((1, D_pad)),              # layer 1
                rep((D_pad, D_pad)), rep((1, D_pad)),              # layer 2
                rep((D_pad, D_pad)), rep((1, D_pad)),              # layer 3
                rep((1, D_pad)), rep((1, 1)),                      # layer 4 row weight + bias
            ],
            out_specs=pl.BlockSpec((1, tile_b), lambda i: (0, i)), # lane-dense output row
        ),
        compiler_params=pltpu.CompilerParams(
            dimension_semantics=("parallel",),
            vmem_limit_bytes=vmem_limit_bytes),
        cost_estimate=cost,
    )(x_p, w1, b1, w2, b2, w3, b3, w4, b4)

    # (1, B_pad) row -> (B, 1) column, dropping the batch padding.
    return out.reshape(-1)[:B].reshape(B, 1).astype(x.dtype)


def init_params(key, input_size):
    """Deterministic init mimicking nn.Linear's U(-1/sqrt(fan_in), 1/sqrt(fan_in))."""
    ks = jax.random.split(key, 8)
    bound = 1.0 / jnp.sqrt(jnp.float32(input_size))
    u = lambda k, shape: jax.random.uniform(k, shape, jnp.float32, -bound, bound)
    return {
        "w1": u(ks[0], (input_size, input_size)), "b1": u(ks[1], (input_size,)),
        "w2": u(ks[2], (input_size, input_size)), "b2": u(ks[3], (input_size,)),
        "w3": u(ks[4], (input_size, input_size)), "b3": u(ks[5], (input_size,)),
        "w4": u(ks[6], (1, input_size)),          "b4": u(ks[7], (1,)),
    }


def _reference_forward(x, params):
    sp = lambda v: jnp.where(v > 20.0,
                             v,
                             jnp.maximum(v, 0.0) + jnp.log1p(jnp.exp(-jnp.abs(v))))
    h = sp(x @ params["w1"].T + params["b1"])
    h = sp(h @ params["w2"].T + params["b2"])
    h = sp(h @ params["w3"].T + params["b3"])
    return h @ params["w4"].T + params["b4"]


if __name__ == "__main__":
    key = jax.random.PRNGKey(0)
    k_x, k_p = jax.random.split(key)

    batch, input_size = 8, 32
    x = jax.random.normal(k_x, (batch, input_size), jnp.float32)
    params = init_params(k_p, input_size)
    ref = _reference_forward(x, params)

    # Default bf16-matmul path (f32 accumulation) -> loosened tolerance.
    out = jax.block_until_ready(mlp_regression_forward(x, params))
    assert out.shape == (batch, 1)
    assert jnp.allclose(out, ref, atol=3e-2, rtol=3e-2)

    # Exact f32 fallback path.
    out_f32 = jax.block_until_ready(mlp_regression_forward(x, params, use_bf16=False))
    assert jnp.allclose(out_f32, ref, atol=1e-5, rtol=1e-5)

    print("KERNEL_OK")
</pallas_src>

<mosaic_0001>
module attributes {stable_mosaic.version = 11 : i64} {
  func.func @_mlp_kernel(%arg0: i32, %arg1: memref<128x128xbf16, #tpu.memory_space<vmem>>, %arg2: memref<128x128xbf16, #tpu.memory_space<vmem>>, %arg3: memref<1x128xf32, #tpu.memory_space<vmem>>, %arg4: memref<128x128xbf16, #tpu.memory_space<vmem>>, %arg5: memref<1x128xf32, #tpu.memory_space<vmem>>, %arg6: memref<128x128xbf16, #tpu.memory_space<vmem>>, %arg7: memref<1x128xf32, #tpu.memory_space<vmem>>, %arg8: memref<1x128xbf16, #tpu.memory_space<vmem>>, %arg9: memref<1x1xf32, #tpu.memory_space<vmem>>, %arg10: memref<1x128xf32, #tpu.memory_space<vmem>>) attributes {dimension_semantics = [#tpu.dimension_semantics<parallel>], iteration_bounds = array<i64: 1>, scalar_prefetch = 0 : i64, scratch_operands = 0 : i64, tpu.core_type = #tpu.core_type<tc>, window_params = [{transform_indices = @transform_0, window_bounds = array<i64: 128, 128>}, {pipeline_mode = #tpu.pipeline_mode<synchronous>, transform_indices = @transform_1, window_bounds = array<i64: 128, 128>}, {pipeline_mode = #tpu.pipeline_mode<synchronous>, transform_indices = @transform_2, window_bounds = array<i64: 1, 128>}, {pipeline_mode = #tpu.pipeline_mode<synchronous>, transform_indices = @transform_3, window_bounds = array<i64: 128, 128>}, {pipeline_mode = #tpu.pipeline_mode<synchronous>, transform_indices = @transform_4, window_bounds = array<i64: 1, 128>}, {pipeline_mode = #tpu.pipeline_mode<synchronous>, transform_indices = @transform_5, window_bounds = array<i64: 128, 128>}, {pipeline_mode = #tpu.pipeline_mode<synchronous>, transform_indices = @transform_6, window_bounds = array<i64: 1, 128>}, {pipeline_mode = #tpu.pipeline_mode<synchronous>, transform_indices = @transform_7, window_bounds = array<i64: 1, 128>}, {pipeline_mode = #tpu.pipeline_mode<synchronous>, transform_indices = @transform_8, window_bounds = array<i64: 1, 1>}, {transform_indices = @transform_9, window_bounds = array<i64: 1, 128>}]} {
    %c0 = arith.constant 0 : index
    %c0_0 = arith.constant 0 : index
    %0 = vector.load %arg1[%c0, %c0_0] : memref<128x128xbf16, #tpu.memory_space<vmem>>, vector<128x128xbf16>
    %c0_1 = arith.constant 0 : index
    %c0_2 = arith.constant 0 : index
    %1 = vector.load %arg2[%c0_1, %c0_2] : memref<128x128xbf16, #tpu.memory_space<vmem>>, vector<128x128xbf16>
    %cst = arith.constant dense<0.000000e+00> : vector<128x128xf32>
    %2 = tpu.matmul %0, %1, %cst {dimension_numbers = #tpu.dot_dimension_numbers<[1], [0], [0], [1], [0, 0, 1, 1], [], []>} : vector<128x128xbf16>, vector<128x128xbf16>, vector<128x128xf32> -> vector<128x128xf32>
    %c0_3 = arith.constant 0 : index
    %c0_4 = arith.constant 0 : index
    %3 = vector.load %arg3[%c0_3, %c0_4] : memref<1x128xf32, #tpu.memory_space<vmem>>, vector<1x128xf32>
    %4 = vector.broadcast %3 : vector<1x128xf32> to vector<128x128xf32>
    %5 = arith.addf %2, %4 : vector<128x128xf32>
    %cst_5 = arith.constant 0.000000e+00 : f32
    %6 = vector.broadcast %cst_5 : f32 to vector<128x128xf32>
    %7 = arith.maximumf %5, %6 : vector<128x128xf32>
    %8 = math.absf %5 : vector<128x128xf32>
    %cst_6 = arith.constant 0.000000e+00 : f32
    %9 = vector.broadcast %cst_6 : f32 to vector<128x128xf32>
    %10 = arith.subf %9, %8 : vector<128x128xf32>
    %11 = math.exp %10 : vector<128x128xf32>
    %12 = math.log1p %11 : vector<128x128xf32>
    %13 = arith.addf %7, %12 : vector<128x128xf32>
    %cst_7 = arith.constant 2.000000e+01 : f32
    %14 = vector.broadcast %cst_7 : f32 to vector<128x128xf32>
    %15 = arith.cmpf ogt, %5, %14 : vector<128x128xf32>
    %16 = arith.select %15, %5, %13 : vector<128x128xi1>, vector<128x128xf32>
    %17 = arith.truncf %16 : vector<128x128xf32> to vector<128x128xbf16>
    %c0_8 = arith.constant 0 : index
    %c0_9 = arith.constant 0 : index
    %18 = vector.load %arg4[%c0_8, %c0_9] : memref<128x128xbf16, #tpu.memory_space<vmem>>, vector<128x128xbf16>
    %cst_10 = arith.constant dense<0.000000e+00> : vector<128x128xf32>
    %19 = tpu.matmul %17, %18, %cst_10 {dimension_numbers = #tpu.dot_dimension_numbers<[1], [0], [0], [1], [0, 0, 1, 1], [], []>} : vector<128x128xbf16>, vector<128x128xbf16>, vector<128x128xf32> -> vector<128x128xf32>
    %c0_11 = arith.constant 0 : index
    %c0_12 = arith.constant 0 : index
    %20 = vector.load %arg5[%c0_11, %c0_12] : memref<1x128xf32, #tpu.memory_space<vmem>>, vector<1x128xf32>
    %21 = vector.broadcast %20 : vector<1x128xf32> to vector<128x128xf32>
    %22 = arith.addf %19, %21 : vector<128x128xf32>
    %cst_13 = arith.constant 0.000000e+00 : f32
    %23 = vector.broadcast %cst_13 : f32 to vector<128x128xf32>
    %24 = arith.maximumf %22, %23 : vector<128x128xf32>
    %25 = math.absf %22 : vector<128x128xf32>
    %cst_14 = arith.constant 0.000000e+00 : f32
    %26 = vector.broadcast %cst_14 : f32 to vector<128x128xf32>
    %27 = arith.subf %26, %25 : vector<128x128xf32>
    %28 = math.exp %27 : vector<128x128xf32>
    %29 = math.log1p %28 : vector<128x128xf32>
    %30 = arith.addf %24, %29 : vector<128x128xf32>
    %cst_15 = arith.constant 2.000000e+01 : f32
    %31 = vector.broadcast %cst_15 : f32 to vector<128x128xf32>
    %32 = arith.cmpf ogt, %22, %31 : vector<128x128xf32>
    %33 = arith.select %32, %22, %30 : vector<128x128xi1>, vector<128x128xf32>
    %34 = arith.truncf %33 : vector<128x128xf32> to vector<128x128xbf16>
    %c0_16 = arith.constant 0 : index
    %c0_17 = arith.constant 0 : index
    %35 = vector.load %arg6[%c0_16, %c0_17] : memref<128x128xbf16, #tpu.memory_space<vmem>>, vector<128x128xbf16>
    %cst_18 = arith.constant dense<0.000000e+00> : vector<128x128xf32>
    %36 = tpu.matmul %34, %35, %cst_18 {dimension_numbers = #tpu.dot_dimension_numbers<[1], [0], [0], [1], [0, 0, 1, 1], [], []>} : vector<128x128xbf16>, vector<128x128xbf16>, vector<128x128xf32> -> vector<128x128xf32>
    %c0_19 = arith.constant 0 : index
    %c0_20 = arith.constant 0 : index
    %37 = vector.load %arg7[%c0_19, %c0_20] : memref<1x128xf32, #tpu.memory_space<vmem>>, vector<1x128xf32>
    %38 = vector.broadcast %37 : vector<1x128xf32> to vector<128x128xf32>
    %39 = arith.addf %36, %38 : vector<128x128xf32>
    %cst_21 = arith.constant 0.000000e+00 : f32
    %40 = vector.broadcast %cst_21 : f32 to vector<128x128xf32>
    %41 = arith.maximumf %39, %40 : vector<128x128xf32>
    %42 = math.absf %39 : vector<128x128xf32>
    %cst_22 = arith.constant 0.000000e+00 : f32
    %43 = vector.broadcast %cst_22 : f32 to vector<128x128xf32>
    %44 = arith.subf %43, %42 : vector<128x128xf32>
    %45 = math.exp %44 : vector<128x128xf32>
    %46 = math.log1p %45 : vector<128x128xf32>
    %47 = arith.addf %41, %46 : vector<128x128xf32>
    %cst_23 = arith.constant 2.000000e+01 : f32
    %48 = vector.broadcast %cst_23 : f32 to vector<128x128xf32>
    %49 = arith.cmpf ogt, %39, %48 : vector<128x128xf32>
    %50 = arith.select %49, %39, %47 : vector<128x128xi1>, vector<128x128xf32>
    %c0_24 = arith.constant 0 : index
    %c0_25 = arith.constant 0 : index
    %51 = vector.load %arg8[%c0_24, %c0_25] : memref<1x128xbf16, #tpu.memory_space<vmem>>, vector<1x128xbf16>
    %52 = arith.truncf %50 : vector<128x128xf32> to vector<128x128xbf16>
    %53 = tpu.transpose %52, [1, 0] : vector<128x128xbf16> -> vector<128x128xbf16>
    %cst_26 = arith.constant dense<0.000000e+00> : vector<1x128xf32>
    %54 = tpu.matmul %51, %53, %cst_26 {dimension_numbers = #tpu.dot_dimension_numbers<[1], [0], [0], [1], [0, 0, 1, 1], [], []>} : vector<1x128xbf16>, vector<128x128xbf16>, vector<1x128xf32> -> vector<1x128xf32>
    %c0_27 = arith.constant 0 : index
    %c0_28 = arith.constant 0 : index
    %55 = vector.load %arg9[%c0_27, %c0_28] : memref<1x1xf32, #tpu.memory_space<vmem>>, vector<1x1xf32>
    %56 = vector.broadcast %55 : vector<1x1xf32> to vector<1x128xf32>
    %57 = arith.addf %54, %56 : vector<1x128xf32>
    %c0_29 = arith.constant 0 : index
    %c0_30 = arith.constant 0 : index
    %58 = vector.load %arg10[%c0_29, %c0_30] : memref<1x128xf32, #tpu.memory_space<vmem>>, vector<1x128xf32>
    tpu.vector_store %arg10[%c0_29, %c0_30], %57 {strides = array<i32>} : memref<1x128xf32, #tpu.memory_space<vmem>>, vector<1x128xf32>,
    return
  }
  func.func @transform_0(%arg0: i32) -> (i32, i32) {
    %c0_i32 = arith.constant 0 : i32
    %c0_i32_0 = arith.constant 0 : i32
    return %arg0, %c0_i32 : i32, i32
  }
  func.func @transform_1(%arg0: i32) -> (i32, i32) {
    %c0_i32 = arith.constant 0 : i32
    %c0_i32_0 = arith.constant 0 : i32
    %c0_i32_1 = arith.constant 0 : i32
    return %c0_i32, %c0_i32_0 : i32, i32
  }
  func.func @transform_2(%arg0: i32) -> (i32, i32) {
    %c0_i32 = arith.constant 0 : i32
    %c0_i32_0 = arith.constant 0 : i32
    %c0_i32_1 = arith.constant 0 : i32
    return %c0_i32, %c0_i32_0 : i32, i32
  }
  func.func @transform_3(%arg0: i32) -> (i32, i32) {
    %c0_i32 = arith.constant 0 : i32
    %c0_i32_0 = arith.constant 0 : i32
    %c0_i32_1 = arith.constant 0 : i32
    return %c0_i32, %c0_i32_0 : i32, i32
  }
  func.func @transform_4(%arg0: i32) -> (i32, i32) {
    %c0_i32 = arith.constant 0 : i32
    %c0_i32_0 = arith.constant 0 : i32
    %c0_i32_1 = arith.constant 0 : i32
    return %c0_i32, %c0_i32_0 : i32, i32
  }
  func.func @transform_5(%arg0: i32) -> (i32, i32) {
    %c0_i32 = arith.constant 0 : i32
    %c0_i32_0 = arith.constant 0 : i32
    %c0_i32_1 = arith.constant 0 : i32
    return %c0_i32, %c0_i32_0 : i32, i32
  }
  func.func @transform_6(%arg0: i32) -> (i32, i32) {
    %c0_i32 = arith.constant 0 : i32
    %c0_i32_0 = arith.constant 0 : i32
    %c0_i32_1 = arith.constant 0 : i32
    return %c0_i32, %c0_i32_0 : i32, i32
  }
  func.func @transform_7(%arg0: i32) -> (i32, i32) {
    %c0_i32 = arith.constant 0 : i32
    %c0_i32_0 = arith.constant 0 : i32
    %c0_i32_1 = arith.constant 0 : i32
    return %c0_i32, %c0_i32_0 : i32, i32
  }
  func.func @transform_8(%arg0: i32) -> (i32, i32) {
    %c0_i32 = arith.constant 0 : i32
    %c0_i32_0 = arith.constant 0 : i32
    %c0_i32_1 = arith.constant 0 : i32
    return %c0_i32, %c0_i32_0 : i32, i32
  }
  func.func @transform_9(%arg0: i32) -> (i32, i32) {
    %c0_i32 = arith.constant 0 : i32
    %c0_i32_0 = arith.constant 0 : i32
    return %c0_i32, %arg0 : i32, i32
  }
}

</mosaic_0001>

<bundles_post_ra>
// kernel: tpu_custom_call.1
= control target key start
LH: loop header
LB: loop body
LE: loop exit
PB: predicated region body
PF: predicated region fallthrough
CT: control target
= control target key end

     0   :  { %s2367_s0 = inlined_call_operand.hbm [shape: bf16[128,128], index: 0, kind: input, shape index: {}]   ;;  %s2368_s1 = inlined_call_operand.hbm [shape: bf16[128,128], index: 1, kind: input, shape index: {}]   ;;  %s2369_s2 = inlined_call_operand.vmem [shape: f32[1,128], index: 2, kind: input, shape index: {}]   ;;  %s2370_s3 = inlined_call_operand.hbm [shape: bf16[128,128], index: 3, kind: input, shape index: {}]   ;;  %s2371_s4 = inlined_call_operand.vmem [shape: f32[1,128], index: 4, kind: input, shape index: {}]   ;;  %s2372_s5 = inlined_call_operand.hbm [shape: bf16[128,128], index: 5, kind: input, shape index: {}]   ;;  %s2373_s6 = inlined_call_operand.vmem [shape: f32[1,128], index: 6, kind: input, shape index: {}]   ;;  %s2374_s7 = inlined_call_operand.vmem [shape: bf16[1,128], index: 7, kind: input, shape index: {}]   ;;  %s2375_s8 = inlined_call_operand.<no memory space> [shape: f32[1,1], index: 8, kind: input, shape index: {}]   ;;  %s2376_s9 = inlined_call_operand.hbm [shape: f32[1,128], index: 9, kind: output, shape index: {}]  }
   0x1   :  { %v14_v0 = vstv %s2375_s8 }
   0x2   :  { %15 = vst [vmem:[#allocation2] sm:$0x1] %v14_v0 }
   0x3   :  { %16 = vsyncpa [#allocation4], 0 }
   0x4   :  { %17 = vsyncpa [#allocation7], 0 }
   0x5   :  { %18 = vsyncpa [#allocation10], 0 }
   0x6   :  { %19 = vsyncpa [#allocation5], 0  ;;  %s37_s13 = sshll.u32 %s2368_s1, 4  ;;  %s1886_s14 = smov [#allocation6]   ;;  %s38_s13 = int_to_ptr.hbm [resolvable:$true] %s37_s13 }
   0x7   :  { %s39_s15 = sshll.u32 %s1886_s14, 4  ;;  %s24_s18 = sshll.u32 %s2367_s0, 4  ;;  %s40_s15 = int_to_ptr.vmem [resolvable:$true] %s39_s15  ;;  %s25_s18 = int_to_ptr.hbm [resolvable:$true] %s24_s18 }
   0x8   :  { %s1887_s19 = smov 64   ;;  %s1888_s20 = smov 4  }
   0x9   :  { %45 = dma.hbm_to_vmem [thread:$0]  %s38_s13, 1024, %s40_s15, [#allocation7], %s1887_s19, %s1887_s19, %s1888_s20  }
   0xa   :  { %s1889_s8 = smov [#allocation3]   ;;  %s52_s24 = sshll.u32 %s2370_s3, 4  ;;  %s53_s24 = int_to_ptr.hbm [resolvable:$true] %s52_s24 }
   0xb   :  { %s26_s21 = sshll.u32 %s1889_s8, 4  ;;  %s67_s26 = sshll.u32 %s2372_s5, 4  ;;  %s27_s21 = int_to_ptr.vmem [resolvable:$true] %s26_s21  ;;  %s68_s26 = int_to_ptr.hbm [resolvable:$true] %s67_s26 }
   0xc   :  { %32 = dma.hbm_to_vmem [thread:$0]  %s25_s18, 1024, %s27_s21, [#allocation4], %s1887_s19, %s1887_s19, %s1888_s20  }
   0xd   :  { %s1890_s27 = smov [#allocation8]   ;;  %s1891_s0 = smov [#allocation9]  }
   0xe   :  { %s54_s28 = sshll.u32 %s1890_s27, 4  ;;  %s69_s29 = sshll.u32 %s1891_s0, 4  ;;  %s55_s28 = int_to_ptr.vmem [resolvable:$true] %s54_s28  ;;  %s70_s29 = int_to_ptr.vmem [resolvable:$true] %s69_s29 }
   0xf   :  { %60 = dma.hbm_to_vmem [thread:$0]  %s53_s24, 1024, %s55_s28, [#allocation7], %s1887_s19, %s1887_s19, %s1888_s20  }
  0x10   :  { %75 = dma.hbm_to_vmem [thread:$0]  %s68_s26, 1024, %s70_s29, [#allocation10], %s1887_s19, %s1887_s19, %s1888_s20  }
  0x11   :  { %1878 = dma.done.wait [#allocation4], 1024  }
  0x12   :  { %1879 = vsyncadd [#allocation4], 4294966272 }
  0x13   :  { %1880 = dma.done.wait [#allocation7], 2048  }
  0x14   :  { %1881 = vsyncadd [#allocation7], 4294965248 }
  0x15   :  { %1882 = dma.done.wait [#allocation10], 1024  }
  0x16   :  { %1883 = vsyncadd [#allocation10], 4294966272  ;;  %v1537_v1 = vld [vmem:[#allocation6 + $0x38] sm:$0xff]  ;;  %v1536_v2 = vld [vmem:[#allocation6 + $0x30] sm:$0xff]  ;;  %s1893_s12 = smov [#allocation11]   ;;  %s1382_s16 = sshll.u32 %s2376_s9, 4  ;;  %s1383_s16 = int_to_ptr.hbm [resolvable:$true] %s1382_s16 }
  0x17   :  { %230 = vmatpush.bf16.msra.mxu0 %v1537_v1  ;;  %v1535_v3 = vld [vmem:[#allocation6 + $0x28] sm:$0xff]  ;;  %v1534_v4 = vld [vmem:[#allocation6 + $0x20] sm:$0xff]  ;;  %v1533_v5 = vld [vmem:[#allocation6 + $0x18] sm:$0xff]  ;;  %s1380_s13 = sshll.u32 %s1893_s12, 4  ;;  %s1381_s13 = int_to_ptr.vmem [resolvable:$true] %s1380_s13 }
  0x18   :  { %v1532_v6 = vld [vmem:[#allocation6 + $0x10] sm:$0xff]  ;;  %v1531_v7 = vld [vmem:[#allocation6 + $0x8] sm:$0xff]  ;;  %v1530_v8 = vld [vmem:[#allocation6] sm:$0xff] }
  0x19   :  { %v1522_v9 = vld [vmem:[#allocation3] sm:$0xff]  ;;  %v1523_v10 = vld [vmem:[#allocation3 + $0x8] sm:$0xff]  ;;  %v1524_v11 = vld [vmem:[#allocation3 + $0x10] sm:$0xff] }
  0x1a   :  { %v1525_v12 = vld [vmem:[#allocation3 + $0x18] sm:$0xff]  ;;  %v1526_v13 = vld [vmem:[#allocation3 + $0x20] sm:$0xff]  ;;  %v1527_v14 = vld [vmem:[#allocation3 + $0x28] sm:$0xff] }
  0x1b   :  { %231 = vmatpush.bf16.msra.mxu0 %v1536_v2  ;;  %v1528_v15 = vld [vmem:[#allocation3 + $0x30] sm:$0xff]  ;;  %v1545_v16 = vld [vmem:[#allocation8 + $0x38] sm:$0xff]  ;;  %v1543_v19 = vld [vmem:[#allocation8 + $0x28] sm:$0xff] }
  0x1c   :  { %627 = vmatpush.bf16.msra.mxu1 %v1545_v16  ;;  %v1544_v17 = vld [vmem:[#allocation8 + $0x30] sm:$0xff]  ;;  %v1529_v18 = vld [vmem:[#allocation3 + $0x38] sm:$0xff]  ;;  %v1542_v20 = vld [vmem:[#allocation8 + $0x20] sm:$0xff] }
  0x1d   :  { %v1541_v21 = vld [vmem:[#allocation8 + $0x18] sm:$0xff]  ;;  %v1540_v22 = vld [vmem:[#allocation8 + $0x10] sm:$0xff]  ;;  %v1539_v25 = vld [vmem:[#allocation8 + $0x8] sm:$0xff] }
  0x1e   :  { %v1962_v23 = vld [vmem:[%s2369_s2] ss:$0 sm:$0xff]  ;;  %v1538_v28 = vld [vmem:[#allocation8] sm:$0xff] }
  0x1f   :  { %232 = vmatpush.bf16.msra.mxu0 %v1535_v3 }
  0x20   :  { %628 = vmatpush.bf16.msra.mxu1 %v1544_v17 }
  0x23   :  { %233 = vmatpush.bf16.msra.mxu0 %v1534_v4 }
  0x24   :  { %629 = vmatpush.bf16.msra.mxu1 %v1543_v19 }
  0x27   :  { %234 = vmatpush.bf16.msra.mxu0 %v1533_v5 }
  0x28   :  { %630 = vmatpush.bf16.msra.mxu1 %v1542_v20 }
  0x2b   :  { %235 = vmatpush.bf16.msra.mxu0 %v1532_v6 }
  0x2c   :  { %631 = vmatpush.bf16.msra.mxu1 %v1541_v21 }
  0x2f   :  { %236 = vmatpush.bf16.msra.mxu0 %v1531_v7 }
  0x30   :  { %632 = vmatpush.bf16.msra.mxu1 %v1540_v22 }
  0x33   :  { %237 = vmatpush.bf16.msra.mxu0 %v1530_v8 }
  0x34   :  { %633 = vmatpush.bf16.msra.mxu1 %v1539_v25 }
  0x36   :  { %238 = vmatmul.bf16.vlgmr.msra.gmra.mxu0 %v1522_v9 }
  0x38   :  { %634 = vmatpush.bf16.msra.mxu1 %v1538_v28 }
  0x46   :  { %243 = vmatmul.bf16.gmra.mxu0 %v1523_v10 }
  0x56   :  { %248 = vmatmul.bf16.gmra.mxu0 %v1524_v11 }
  0x66   :  { %253 = vmatmul.bf16.gmra.mxu0 %v1525_v12 }
  0x76   :  { %258 = vmatmul.bf16.gmra.mxu0 %v1526_v13 }
  0x86   :  { %263 = vmatmul.bf16.gmra.mxu0 %v1527_v14 }
  0x96   :  { %268 = vmatmul.bf16.gmra.mxu0 %v1528_v15 }
  0xa6   :  { %273 = vmatmul.bf16.gmra.mxu0 %v1529_v18 }
  0xb3   :  { %v239_v24 = vpop.f32.mrf.mxu0 }
  0xb4   :  { %v1965_v26 = vadd.f32 %v1962_v23, %v239_v24 }
  0xb6   :  { %v295_v27 = vand.u32 2147483647, %v1965_v26  ;;  %v279_v62 = vmax.f32 %v1965_v26, 0.0  ;;  %vm519_vm2 = vcmp.gt.f32.partialorder %v1965_v26, 20.0 }
  0xb8   :  { %v311_v29 = vsub.f32 0.0, %v295_v27 }
  0xba   :  { %v327_v30 = vmul.f32 1.442695, %v311_v29 }
  0xbb   :  { %v241_v31 = vpop.f32.mrf.mxu0 }
  0xbc   :  { %1566 = vpow2.f32 %v327_v30  ;;  %v242_v32 = vadd.f32 %v1962_v23, %v241_v31 }
  0xbe   :  { %v296_v33 = vand.u32 2147483647, %v242_v32  ;;  %v280_v4 = vmax.f32 %v242_v32, 0.0  ;;  %vm520_vm3 = vcmp.gt.f32.partialorder %v242_v32, 20.0 }
  0xc0   :  { %v312_v34 = vsub.f32 0.0, %v296_v33 }
  0xc2   :  { %v1567_v35 = vpop.eup %1566  ;;  %v329_v36 = vmul.f32 1.442695, %v312_v34 }
  0xc3   :  { %v244_v37 = vpop.f32.mrf.mxu0  ;;  %v359_v38 = vadd.f32 1.0, %v1567_v35  ;;  %v362_v42 = vmul.f32 -0.5, %v1567_v35  ;;  %v365_v51 = vand.u32 2147483647, %v1567_v35 }
  0xc4   :  { %1568 = vpow2.f32 %v329_v36  ;;  %v1970_v39 = vadd.f32 %v1962_v23, %v244_v37 }
  0xc5   :  { %1570 = vlog2.f32 %v359_v38  ;;  %v363_v49 = vadd.f32 1.0, %v362_v42  ;;  %vm366_vm0 = vcmp.lt.f32.partialorder %v365_v51, 0.0004427343 }
  0xc6   :  { %v297_v40 = vand.u32 2147483647, %v1970_v39  ;;  %v281_v34 = vmax.f32 %v1970_v39, 0.0  ;;  %vm521_vm6 = vcmp.gt.f32.partialorder %v1970_v39, 20.0 }
  0xc7   :  { %v364_v55 = vmul.f32 %v1567_v35, %v363_v49 }
  0xc8   :  { %v313_v41 = vsub.f32 0.0, %v297_v40 }
  0xca   :  { %v1569_v43 = vpop.eup %1568  ;;  %v331_v44 = vmul.f32 1.442695, %v313_v41 }
  0xcb   :  { %v1571_v45 = vpop.eup %1570  ;;  %v246_v46 = vpop.f32.mrf.mxu0  ;;  %v368_v47 = vadd.f32 1.0, %v1569_v43  ;;  %v371_v50 = vmul.f32 -0.5, %v1569_v43  ;;  %v374_v57 = vand.u32 2147483647, %v1569_v43 }
  0xcc   :  { %1572 = vpow2.f32 %v331_v44  ;;  %v1974_v48 = vadd.f32 %v1962_v23, %v246_v46  ;;  %v361_v53 = vmul.f32 0.6931472, %v1571_v45 }
  0xcd   :  { %1574 = vlog2.f32 %v368_v47  ;;  %v372_v56 = vadd.f32 1.0, %v371_v50  ;;  %vm375_vm1 = vcmp.lt.f32.partialorder %v374_v57, 0.0004427343 }
  0xce   :  { %v298_v52 = vand.u32 2147483647, %v1974_v48  ;;  %v367_v60 = vsel %vm366_vm0, %v364_v55, %v361_v53  ;;  %v282_v41 = vmax.f32 %v1974_v48, 0.0  ;;  %vm522_vm7 = vcmp.gt.f32.partialorder %v1974_v48, 20.0 }
  0xcf   :  { %v373_v3 = vmul.f32 %v1569_v43, %v372_v56  ;;  %v503_v5 = vadd.f32 %v367_v60, %v279_v62 }
  0xd0   :  { %v314_v54 = vsub.f32 0.0, %v298_v52 }
  0xd1   :  { %v535_v11 = vsel %vm519_vm2, %v1965_v26, %v503_v5 }
  0xd2   :  { %v1573_v58 = vpop.eup %1572  ;;  %v333_v59 = vmul.f32 1.442695, %v314_v54 }
  0xd3   :  { %v1575_v61 = vpop.eup %1574  ;;  %v249_v63 = vpop.f32.mrf.mxu0  ;;  %v377_v0 = vadd.f32 1.0, %v1573_v58  ;;  %v380_v10 = vmul.f32 -0.5, %v1573_v58  ;;  %v383_v22 = vand.u32 2147483647, %v1573_v58 }
  0xd4   :  { %1576 = vpow2.f32 %v333_v59  ;;  %v1979_v1 = vadd.f32 %v1962_v23, %v249_v63  ;;  %v370_v2 = vmul.f32 0.6931472, %v1575_v61 }
  0xd5   :  { %1578 = vlog2.f32 %v377_v0  ;;  %v381_v20 = vadd.f32 1.0, %v380_v10  ;;  %vm384_vm4 = vcmp.lt.f32.partialorder %v383_v22, 0.0004427343 }
  0xd6   :  { %v299_v6 = vand.u32 2147483647, %v1979_v1  ;;  %v376_v7 = vsel %vm375_vm1, %v373_v3, %v370_v2  ;;  %vm523_vm10 = vcmp.gt.f32.partialorder %v1979_v1, 20.0 }
  0xd7   :  { %v504_v8 = vadd.f32 %v376_v7, %v280_v4  ;;  %v382_v27 = vmul.f32 %v1573_v58, %v381_v20 }
  0xd8   :  { %v315_v9 = vsub.f32 0.0, %v299_v6  ;;  %v283_v6 = vmax.f32 %v1979_v1, 0.0 }
  0xd9   :  { %v536_v12 = vsel %vm520_vm3, %v242_v32, %v504_v8 }
  0xda   :  { %v1577_v13 = vpop.eup %1576  ;;  %v335_v14 = vmul.f32 1.442695, %v315_v9  ;;  %v551_v15 = vpack.c.bf16 %v536_v12, %v535_v11 }
  0xdb   :  { %v1579_v16 = vpop.eup %1578  ;;  %v251_v17 = vpop.f32.mrf.mxu0  ;;  %v386_v18 = vadd.f32 1.0, %v1577_v13  ;;  %v389_v21 = vmul.f32 -0.5, %v1577_v13  ;;  %v392_v29 = vand.u32 2147483647, %v1577_v13 }
  0xdc   :  { %1580 = vpow2.f32 %v335_v14  ;;  %v1985_v19 = vadd.f32 %v1962_v23, %v251_v17  ;;  %635 = vmatmul.bf16.vlgmr.msra.gmra.mxu1 %v551_v15  ;;  %v379_v25 = vmul.f32 0.6931472, %v1579_v16 }
  0xdd   :  { %1582 = vlog2.f32 %v386_v18  ;;  %v390_v28 = vadd.f32 1.0, %v389_v21  ;;  %vm393_vm5 = vcmp.lt.f32.partialorder %v392_v29, 0.0004427343 }
  0xde   :  { %v300_v24 = vand.u32 2147483647, %v1985_v19  ;;  %v385_v32 = vsel %vm384_vm4, %v382_v27, %v379_v25  ;;  %v284_v12 = vmax.f32 %v1985_v19, 0.0  ;;  %vm524_vm11 = vcmp.gt.f32.partialorder %v1985_v19, 20.0 }
  0xdf   :  { %v391_v40 = vmul.f32 %v1577_v13, %v390_v28  ;;  %v505_v42 = vadd.f32 %v385_v32, %v281_v34 }
  0xe0   :  { %v316_v26 = vsub.f32 0.0, %v300_v24 }
  0xe1   :  { %v537_v49 = vsel %vm521_vm6, %v1970_v39, %v505_v42 }
  0xe2   :  { %v1581_v30 = vpop.eup %1580  ;;  %v337_v31 = vmul.f32 1.442695, %v316_v26 }
  0xe3   :  { %v1583_v33 = vpop.eup %1582  ;;  %v254_v35 = vpop.f32.mrf.mxu0  ;;  %v395_v36 = vadd.f32 1.0, %v1581_v30  ;;  %v398_v47 = vmul.f32 -0.5, %v1581_v30  ;;  %v401_v60 = vand.u32 2147483647, %v1581_v30 }
  0xe4   :  { %1584 = vpow2.f32 %v337_v31  ;;  %v1990_v37 = vadd.f32 %v1962_v23, %v254_v35  ;;  %v388_v38 = vmul.f32 0.6931472, %v1583_v33 }
  0xe5   :  { %1586 = vlog2.f32 %v395_v36  ;;  %v399_v58 = vadd.f32 1.0, %v398_v47  ;;  %vm402_vm8 = vcmp.lt.f32.partialorder %v401_v60, 0.0004427343 }
  0xe6   :  { %v301_v43 = vand.u32 2147483647, %v1990_v37  ;;  %v394_v44 = vsel %vm393_vm5, %v391_v40, %v388_v38  ;;  %vm525_vm14 = vcmp.gt.f32.partialorder %v1990_v37, 20.0 }
  0xe7   :  { %v506_v45 = vadd.f32 %v394_v44, %v282_v41 }
  0xe8   :  { %v317_v46 = vsub.f32 0.0, %v301_v43  ;;  %v285_v43 = vmax.f32 %v1990_v37, 0.0 }
  0xe9   :  { %v538_v50 = vsel %vm522_vm7, %v1974_v48, %v506_v45  ;;  %v400_v48 = vmul.f32 %v1581_v30, %v399_v58 }
  0xea   :  { %v1585_v51 = vpop.eup %1584  ;;  %v339_v52 = vmul.f32 1.442695, %v317_v46  ;;  %v552_v53 = vpack.c.bf16 %v538_v50, %v537_v49 }
  0xeb   :  { %v1587_v54 = vpop.eup %1586  ;;  %v256_v55 = vpop.f32.mrf.mxu0  ;;  %v404_v56 = vadd.f32 1.0, %v1585_v51  ;;  %v407_v59 = vmul.f32 -0.5, %v1585_v51  ;;  %v410_v0 = vand.u32 2147483647, %v1585_v51 }
  0xec   :  { %1588 = vpow2.f32 %v339_v52  ;;  %v1999_v57 = vadd.f32 %v1962_v23, %v256_v55  ;;  %640 = vmatmul.bf16.gmra.mxu1 %v552_v53  ;;  %v397_v39 = vmul.f32 0.6931472, %v1587_v54 }
  0xed   :  { %1590 = vlog2.f32 %v404_v56  ;;  %v408_v63 = vadd.f32 1.0, %v407_v59  ;;  %vm411_vm9 = vcmp.lt.f32.partialorder %v410_v0, 0.0004427343 }
  0xee   :  { %v302_v61 = vand.u32 2147483647, %v1999_v57  ;;  %v403_v4 = vsel %vm402_vm8, %v400_v48, %v397_v39  ;;  %v286_v50 = vmax.f32 %v1999_v57, 0.0  ;;  %vm526_vm15 = vcmp.gt.f32.partialorder %v1999_v57, 20.0 }
  0xef   :  { %v409_v11 = vmul.f32 %v1585_v51, %v408_v63  ;;  %v507_v13 = vadd.f32 %v403_v4, %v283_v6 }
  0xf0   :  { %v318_v62 = vsub.f32 0.0, %v302_v61 }
  0xf1   :  { %v539_v20 = vsel %vm523_vm10, %v1979_v1, %v507_v13 }
  0xf2   :  { %v1589_v2 = vpop.eup %1588  ;;  %v341_v3 = vmul.f32 1.442695, %v318_v62 }
  0xf3   :  { %v1591_v5 = vpop.eup %1590  ;;  %v259_v7 = vpop.f32.mrf.mxu0  ;;  %v413_v8 = vadd.f32 1.0, %v1589_v2  ;;  %v416_v18 = vmul.f32 -0.5, %v1589_v2  ;;  %v419_v32 = vand.u32 2147483647, %v1589_v2 }
  0xf4   :  { %1592 = vpow2.f32 %v341_v3  ;;  %v2004_v9 = vadd.f32 %v1962_v23, %v259_v7  ;;  %v406_v10 = vmul.f32 0.6931472, %v1591_v5 }
  0xf5   :  { %1594 = vlog2.f32 %v413_v8  ;;  %v417_v30 = vadd.f32 1.0, %v416_v18  ;;  %vm420_vm12 = vcmp.lt.f32.partialorder %v419_v32, 0.0004427343 }
  0xf6   :  { %v303_v14 = vand.u32 2147483647, %v2004_v9  ;;  %v412_v15 = vsel %vm411_vm9, %v409_v11, %v406_v10  ;;  %vm527_vm2 = vcmp.gt.f32.partialorder %v2004_v9, 20.0 }
  0xf7   :  { %v508_v16 = vadd.f32 %v412_v15, %v284_v12 }
  0xf8   :  { %v319_v17 = vsub.f32 0.0, %v303_v14  ;;  %v287_v14 = vmax.f32 %v2004_v9, 0.0 }
  0xf9   :  { %v540_v21 = vsel %vm524_vm11, %v1985_v19, %v508_v16  ;;  %v418_v19 = vmul.f32 %v1589_v2, %v417_v30 }
  0xfa   :  { %v1593_v22 = vpop.eup %1592  ;;  %v343_v24 = vmul.f32 1.442695, %v319_v17  ;;  %v553_v25 = vpack.c.bf16 %v540_v21, %v539_v20 }
  0xfb   :  { %v1595_v26 = vpop.eup %1594  ;;  %v261_v27 = vpop.f32.mrf.mxu0  ;;  %v422_v28 = vadd.f32 1.0, %v1593_v22  ;;  %v425_v31 = vmul.f32 -0.5, %v1593_v22  ;;  %v428_v36 = vand.u32 2147483647, %v1593_v22 }
  0xfc   :  { %1596 = vpow2.f32 %v343_v24  ;;  %v2013_v29 = vadd.f32 %v1962_v23, %v261_v27  ;;  %645 = vmatmul.bf16.gmra.mxu1 %v553_v25  ;;  %v415_v1 = vmul.f32 0.6931472, %v1595_v26 }
  0xfd   :  { %1598 = vlog2.f32 %v422_v28  ;;  %v426_v35 = vadd.f32 1.0, %v425_v31  ;;  %vm429_vm13 = vcmp.lt.f32.partialorder %v428_v36, 0.0004427343 }
  0xfe   :  { %v304_v33 = vand.u32 2147483647, %v2013_v29  ;;  %v421_v41 = vsel %vm420_vm12, %v418_v19, %v415_v1  ;;  %v288_v21 = vmax.f32 %v2013_v29, 0.0  ;;  %vm528_vm3 = vcmp.gt.f32.partialorder %v2013_v29, 20.0 }
  0xff   :  { %v427_v49 = vmul.f32 %v1593_v22, %v426_v35  ;;  %v509_v51 = vadd.f32 %v421_v41, %v285_v43 }
 0x100   :  { %v320_v34 = vsub.f32 0.0, %v304_v33 }
 0x101   :  { %v541_v58 = vsel %vm525_vm14, %v1990_v37, %v509_v51 }
 0x102   :  { %v1597_v38 = vpop.eup %1596  ;;  %v345_v40 = vmul.f32 1.442695, %v320_v34 }
 0x103   :  { %v1599_v42 = vpop.eup %1598  ;;  %v264_v44 = vpop.f32.mrf.mxu0  ;;  %v431_v45 = vadd.f32 1.0, %v1597_v38  ;;  %v434_v56 = vmul.f32 -0.5, %v1597_v38  ;;  %v437_v4 = vand.u32 2147483647, %v1597_v38 }
 0x104   :  { %1600 = vpow2.f32 %v345_v40  ;;  %v2018_v46 = vadd.f32 %v1962_v23, %v264_v44  ;;  %v424_v47 = vmul.f32 0.6931472, %v1599_v42 }
 0x105   :  { %1602 = vlog2.f32 %v431_v45  ;;  %v435_v2 = vadd.f32 1.0, %v434_v56  ;;  %vm438_vm0 = vcmp.lt.f32.partialorder %v437_v4, 0.0004427343 }
 0x106   :  { %v305_v52 = vand.u32 2147483647, %v2018_v46  ;;  %v430_v53 = vsel %vm429_vm13, %v427_v49, %v424_v47  ;;  %vm529_vm6 = vcmp.gt.f32.partialorder %v2018_v46, 20.0 }
 0x107   :  { %v510_v54 = vadd.f32 %v430_v53, %v286_v50 }
 0x108   :  { %v321_v55 = vsub.f32 0.0, %v305_v52  ;;  %v289_v52 = vmax.f32 %v2018_v46, 0.0 }
 0x109   :  { %v542_v59 = vsel %vm526_vm15, %v1999_v57, %v510_v54  ;;  %v436_v57 = vmul.f32 %v1597_v38, %v435_v2 }
 0x10a   :  { %v1601_v60 = vpop.eup %1600  ;;  %v347_v61 = vmul.f32 1.442695, %v321_v55  ;;  %v554_v39 = vpack.c.bf16 %v542_v59, %v541_v58 }
 0x10b   :  { %v1603_v62 = vpop.eup %1602  ;;  %v266_v48 = vpop.f32.mrf.mxu0  ;;  %v440_v63 = vadd.f32 1.0, %v1601_v60  ;;  %v443_v3 = vmul.f32 -0.5, %v1601_v60  ;;  %v446_v8 = vand.u32 2147483647, %v1601_v60 }
 0x10c   :  { %1604 = vpow2.f32 %v347_v61  ;;  %v2027_v0 = vadd.f32 %v1962_v23, %v266_v48  ;;  %650 = vmatmul.bf16.gmra.mxu1 %v554_v39  ;;  %v433_v37 = vmul.f32 0.6931472, %v1603_v62 }
 0x10d   :  { %1606 = vlog2.f32 %v440_v63  ;;  %v444_v7 = vadd.f32 1.0, %v443_v3  ;;  %vm447_vm1 = vcmp.lt.f32.partialorder %v446_v8, 0.0004427343 }
 0x10e   :  { %v306_v5 = vand.u32 2147483647, %v2027_v0  ;;  %v439_v12 = vsel %vm438_vm0, %v436_v57, %v433_v37  ;;  %v290_v59 = vmax.f32 %v2027_v0, 0.0  ;;  %vm530_vm7 = vcmp.gt.f32.partialorder %v2027_v0, 20.0 }
 0x10f   :  { %v445_v20 = vmul.f32 %v1601_v60, %v444_v7  ;;  %v511_v22 = vadd.f32 %v439_v12, %v287_v14 }
 0x110   :  { %v322_v6 = vsub.f32 0.0, %v306_v5 }
 0x111   :  { %v543_v30 = vsel %vm527_vm2, %v2004_v9, %v511_v22 }
 0x112   :  { %v1605_v10 = vpop.eup %1604  ;;  %v349_v11 = vmul.f32 1.442695, %v322_v6 }
 0x113   :  { %v1607_v13 = vpop.eup %1606  ;;  %v269_v15 = vpop.f32.mrf.mxu0  ;;  %v449_v16 = vadd.f32 1.0, %v1605_v10  ;;  %v452_v28 = vmul.f32 -0.5, %v1605_v10  ;;  %v455_v41 = vand.u32 2147483647, %v1605_v10 }
 0x114   :  { %1608 = vpow2.f32 %v349_v11  ;;  %v2032_v17 = vadd.f32 %v1962_v23, %v269_v15  ;;  %v442_v18 = vmul.f32 0.6931472, %v1607_v13 }
 0x115   :  { %1610 = vlog2.f32 %v449_v16  ;;  %v453_v38 = vadd.f32 1.0, %v452_v28  ;;  %vm456_vm4 = vcmp.lt.f32.partialorder %v455_v41, 0.0004427343 }
 0x116   :  { %v307_v24 = vand.u32 2147483647, %v2032_v17  ;;  %v448_v25 = vsel %vm447_vm1, %v445_v20, %v442_v18  ;;  %vm531_vm10 = vcmp.gt.f32.partialorder %v2032_v17, 20.0 }
 0x117   :  { %v512_v26 = vadd.f32 %v448_v25, %v288_v21 }
 0x118   :  { %v323_v27 = vsub.f32 0.0, %v307_v24 }
 0x119   :  { %v544_v31 = vsel %vm528_vm3, %v2013_v29, %v512_v26  ;;  %v454_v29 = vmul.f32 %v1605_v10, %v453_v38 }
 0x11a   :  { %v1609_v32 = vpop.eup %1608  ;;  %v351_v33 = vmul.f32 1.442695, %v323_v27  ;;  %v555_v1 = vpack.c.bf16 %v544_v31, %v543_v30 }
 0x11b   :  { %v1611_v34 = vpop.eup %1610  ;;  %v271_v19 = vpop.f32.mrf.mxu0  ;;  %v458_v35 = vadd.f32 1.0, %v1609_v32  ;;  %v461_v40 = vmul.f32 -0.5, %v1609_v32  ;;  %v464_v45 = vand.u32 2147483647, %v1609_v32 }
 0x11c   :  { %1612 = vpow2.f32 %v351_v33  ;;  %v2041_v36 = vadd.f32 %v1962_v23, %v271_v19  ;;  %655 = vmatmul.bf16.gmra.mxu1 %v555_v1  ;;  %v451_v9 = vmul.f32 0.6931472, %v1611_v34 }
 0x11d   :  { %1614 = vlog2.f32 %v458_v35  ;;  %v462_v44 = vadd.f32 1.0, %v461_v40  ;;  %vm465_vm5 = vcmp.lt.f32.partialorder %v464_v45, 0.0004427343  ;;  %v1553_v45 = vld [vmem:[#allocation9 + $0x38] sm:$0xff] }
 0x11e   :  { %v308_v42 = vand.u32 2147483647, %v2041_v36  ;;  %v457_v50 = vsel %vm456_vm4, %v454_v29, %v451_v9  ;;  %v292_v27 = vmax.f32 %v2041_v36, 0.0  ;;  %vm532_vm11 = vcmp.gt.f32.partialorder %v2041_v36, 20.0  ;;  %1024 = vmatpush.bf16.msra.mxu2 %v1553_v45 }
 0x11f   :  { %v463_v58 = vmul.f32 %v1609_v32, %v462_v44  ;;  %v513_v60 = vadd.f32 %v457_v50, %v289_v52 }
 0x120   :  { %v324_v43 = vsub.f32 0.0, %v308_v42 }
 0x121   :  { %v545_v2 = vsel %vm529_vm6, %v2018_v46, %v513_v60  ;;  %v1551_v60 = vld [vmem:[#allocation9 + $0x28] sm:$0xff] }
 0x122   :  { %v1613_v47 = vpop.eup %1612  ;;  %v353_v49 = vmul.f32 1.442695, %v324_v43 }
 0x123   :  { %v1615_v51 = vpop.eup %1614  ;;  %v274_v53 = vpop.f32.mrf.mxu0  ;;  %v467_v54 = vadd.f32 1.0, %v1613_v47  ;;  %v470_v63 = vmul.f32 -0.5, %v1613_v47  ;;  %v473_v12 = vand.u32 2147483647, %v1613_v47 }
 0x124   :  { %1616 = vpow2.f32 %v353_v49  ;;  %v2046_v55 = vadd.f32 %v1962_v23, %v274_v53  ;;  %v460_v56 = vmul.f32 0.6931472, %v1615_v51  ;;  %v1552_v53 = vld [vmem:[#allocation9 + $0x30] sm:$0xff] }
 0x125   :  { %1618 = vlog2.f32 %v467_v54  ;;  %v471_v10 = vadd.f32 1.0, %v470_v63  ;;  %vm474_vm8 = vcmp.lt.f32.partialorder %v473_v12, 0.0004427343  ;;  %1025 = vmatpush.bf16.msra.mxu2 %v1552_v53  ;;  %v2073_v63 = vld [vmem:[%s2371_s4] ss:$0 sm:$0xff] }
 0x126   :  { %v309_v61 = vand.u32 2147483647, %v2046_v55  ;;  %v466_v39 = vsel %vm465_vm5, %v463_v58, %v460_v56  ;;  %vm533_vm14 = vcmp.gt.f32.partialorder %v2046_v55, 20.0 }
 0x127   :  { %v514_v62 = vadd.f32 %v466_v39, %v290_v59  ;;  %v1550_v39 = vld [vmem:[#allocation9 + $0x20] sm:$0xff] }
 0x128   :  { %v325_v48 = vsub.f32 0.0, %v309_v61 }
 0x129   :  { %v546_v3 = vsel %vm530_vm7, %v2027_v0, %v514_v62  ;;  %v472_v0 = vmul.f32 %v1613_v47, %v471_v10  ;;  %1026 = vmatpush.bf16.msra.mxu2 %v1551_v60  ;;  %v1549_v62 = vld [vmem:[#allocation9 + $0x18] sm:$0xff] }
 0x12a   :  { %v1617_v4 = vpop.eup %1616  ;;  %v355_v5 = vmul.f32 1.442695, %v325_v48  ;;  %v556_v37 = vpack.c.bf16 %v546_v3, %v545_v2  ;;  %v1548_v48 = vld [vmem:[#allocation9 + $0x10] sm:$0xff]  ;;  %v1547_v3 = vld [vmem:[#allocation9 + $0x8] sm:$0xff] }
 0x12b   :  { %v1619_v6 = vpop.eup %1618  ;;  %v276_v57 = vpop.f32.mrf.mxu0  ;;  %v476_v7 = vadd.f32 1.0, %v1617_v4  ;;  %v479_v11 = vmul.f32 -0.5, %v1617_v4  ;;  %v482_v16 = vand.u32 2147483647, %v1617_v4 }
 0x12c   :  { %1620 = vpow2.f32 %v355_v5  ;;  %v2055_v8 = vadd.f32 %v1962_v23, %v276_v57  ;;  %660 = vmatmul.bf16.gmra.mxu1 %v556_v37  ;;  %v469_v46 = vmul.f32 0.6931472, %v1619_v6  ;;  %v291_v23 = vmax.f32 %v2032_v17, 0.0  ;;  %v1546_v5 = vld [vmem:[#allocation9] sm:$0xff] }
 0x12d   :  { %1622 = vlog2.f32 %v476_v7  ;;  %v480_v15 = vadd.f32 1.0, %v479_v11  ;;  %vm483_vm9 = vcmp.lt.f32.partialorder %v482_v16, 0.0004427343  ;;  %1027 = vmatpush.bf16.msra.mxu2 %v1550_v39 }
 0x12e   :  { %v310_v13 = vand.u32 2147483647, %v2055_v8  ;;  %v475_v21 = vsel %vm474_vm8, %v472_v0, %v469_v46  ;;  %v294_v51 = vmax.f32 %v2055_v8, 0.0  ;;  %vm534_vm15 = vcmp.gt.f32.partialorder %v2055_v8, 20.0 }
 0x12f   :  { %v481_v26 = vmul.f32 %v1617_v4, %v480_v15  ;;  %v515_v28 = vadd.f32 %v475_v21, %v291_v23 }
 0x130   :  { %v326_v14 = vsub.f32 0.0, %v310_v13 }
 0x131   :  { %v547_v33 = vsel %vm531_vm10, %v2032_v17, %v515_v28  ;;  %v293_v17 = vmax.f32 %v2046_v55, 0.0  ;;  %1028 = vmatpush.bf16.msra.mxu2 %v1549_v62 }
 0x132   :  { %v1621_v18 = vpop.eup %1620  ;;  %v357_v20 = vmul.f32 1.442695, %v326_v14 }
 0x133   :  { %v1623_v22 = vpop.eup %1622  ;;  %v485_v24 = vadd.f32 1.0, %v1621_v18  ;;  %v488_v32 = vmul.f32 -0.5, %v1621_v18  ;;  %v491_v42 = vand.u32 2147483647, %v1621_v18 }
 0x134   :  { %1624 = vpow2.f32 %v357_v20  ;;  %v478_v25 = vmul.f32 0.6931472, %v1623_v22 }
 0x135   :  { %1626 = vlog2.f32 %v485_v24  ;;  %v489_v40 = vadd.f32 1.0, %v488_v32  ;;  %vm492_vm12 = vcmp.lt.f32.partialorder %v491_v42, 0.0004427343  ;;  %1029 = vmatpush.bf16.msra.mxu2 %v1548_v48 }
 0x136   :  { %v484_v30 = vsel %vm483_vm9, %v481_v26, %v478_v25 }
 0x137   :  { %v516_v31 = vadd.f32 %v484_v30, %v292_v27  ;;  %v490_v43 = vmul.f32 %v1621_v18, %v489_v40 }
 0x139   :  { %v548_v1 = vsel %vm532_vm11, %v2041_v36, %v516_v31  ;;  %1030 = vmatpush.bf16.msra.mxu2 %v1547_v3 }
 0x13a   :  { %v1625_v34 = vpop.eup %1624  ;;  %v557_v19 = vpack.c.bf16 %v548_v1, %v547_v33 }
 0x13b   :  { %v1627_v35 = vpop.eup %1626  ;;  %v494_v38 = vadd.f32 1.0, %v1625_v34  ;;  %v497_v41 = vmul.f32 -0.5, %v1625_v34  ;;  %v500_v44 = vand.u32 2147483647, %v1625_v34 }
 0x13c   :  { %665 = vmatmul.bf16.gmra.mxu1 %v557_v19  ;;  %v487_v9 = vmul.f32 0.6931472, %v1627_v35 }
 0x13d   :  { %1628 = vlog2.f32 %v494_v38  ;;  %v498_v29 = vadd.f32 1.0, %v497_v41  ;;  %vm501_vm13 = vcmp.lt.f32.partialorder %v500_v44, 0.0004427343  ;;  %1031 = vmatpush.bf16.msra.mxu2 %v1546_v5 }
 0x13e   :  { %v493_v47 = vsel %vm492_vm12, %v490_v43, %v487_v9 }
 0x13f   :  { %v499_v50 = vmul.f32 %v1625_v34, %v498_v29  ;;  %v517_v52 = vadd.f32 %v493_v47, %v293_v17 }
 0x141   :  { %v549_v58 = vsel %vm533_vm14, %v2046_v55, %v517_v52 }
 0x143   :  { %v1629_v49 = vpop.eup %1628 }
 0x144   :  { %v496_v36 = vmul.f32 0.6931472, %v1629_v49 }
 0x146   :  { %v502_v54 = vsel %vm501_vm13, %v499_v50, %v496_v36 }
 0x147   :  { %v518_v56 = vadd.f32 %v502_v54, %v294_v51 }
 0x149   :  { %v550_v59 = vsel %vm534_vm15, %v2055_v8, %v518_v56 }
 0x14a   :  { %v558_v61 = vpack.c.bf16 %v550_v59, %v549_v58 }
 0x14c   :  { %670 = vmatmul.bf16.gmra.mxu1 %v558_v61 }
 0x159   :  { %v636_v2 = vpop.f32.mrf.mxu1 }
 0x15a   :  { %v2076_v55 = vadd.f32 %v2073_v63, %v636_v2 }
 0x15c   :  { %v692_v4 = vand.u32 2147483647, %v2076_v55  ;;  %v676_v40 = vmax.f32 %v2076_v55, 0.0  ;;  %vm916_vm2 = vcmp.gt.f32.partialorder %v2076_v55, 20.0 }
 0x15e   :  { %v708_v37 = vsub.f32 0.0, %v692_v4 }
 0x160   :  { %v724_v6 = vmul.f32 1.442695, %v708_v37 }
 0x161   :  { %v638_v57 = vpop.f32.mrf.mxu1 }
 0x162   :  { %1630 = vpow2.f32 %v724_v6  ;;  %v639_v7 = vadd.f32 %v2073_v63, %v638_v57 }
 0x164   :  { %v693_v8 = vand.u32 2147483647, %v639_v7  ;;  %v677_v44 = vmax.f32 %v639_v7, 0.0  ;;  %vm917_vm3 = vcmp.gt.f32.partialorder %v639_v7, 20.0 }
 0x166   :  { %v709_v10 = vsub.f32 0.0, %v693_v8 }
 0x168   :  { %v1631_v11 = vpop.eup %1630  ;;  %v726_v12 = vmul.f32 1.442695, %v709_v10 }
 0x169   :  { %v641_v13 = vpop.f32.mrf.mxu1  ;;  %v756_v46 = vadd.f32 1.0, %v1631_v11  ;;  %v759_v16 = vmul.f32 -0.5, %v1631_v11  ;;  %v762_v27 = vand.u32 2147483647, %v1631_v11 }
 0x16a   :  { %1632 = vpow2.f32 %v726_v12  ;;  %v2081_v14 = vadd.f32 %v2073_v63, %v641_v13 }
 0x16b   :  { %1634 = vlog2.f32 %v756_v46  ;;  %v760_v25 = vadd.f32 1.0, %v759_v16  ;;  %vm763_vm0 = vcmp.lt.f32.partialorder %v762_v27, 0.0004427343 }
 0x16c   :  { %v694_v0 = vand.u32 2147483647, %v2081_v14  ;;  %v678_v10 = vmax.f32 %v2081_v14, 0.0  ;;  %vm918_vm6 = vcmp.gt.f32.partialorder %v2081_v14, 20.0 }
 0x16d   :  { %v761_v32 = vmul.f32 %v1631_v11, %v760_v25 }
 0x16e   :  { %v710_v15 = vsub.f32 0.0, %v694_v0 }
 0x170   :  { %v1633_v18 = vpop.eup %1632  ;;  %v728_v20 = vmul.f32 1.442695, %v710_v15 }
 0x171   :  { %v1635_v21 = vpop.eup %1634  ;;  %v643_v22 = vpop.f32.mrf.mxu1  ;;  %v765_v23 = vadd.f32 1.0, %v1633_v18  ;;  %v768_v26 = vmul.f32 -0.5, %v1633_v18  ;;  %v771_v1 = vand.u32 2147483647, %v1633_v18 }
 0x172   :  { %1636 = vpow2.f32 %v728_v20  ;;  %v2085_v24 = vadd.f32 %v2073_v63, %v643_v22  ;;  %v758_v30 = vmul.f32 0.6931472, %v1635_v21 }
 0x173   :  { %1638 = vlog2.f32 %v765_v23  ;;  %v769_v33 = vadd.f32 1.0, %v768_v26  ;;  %vm772_vm1 = vcmp.lt.f32.partialorder %v771_v1, 0.0004427343 }
 0x174   :  { %v695_v28 = vand.u32 2147483647, %v2085_v24  ;;  %v764_v35 = vsel %vm763_vm0, %v761_v32, %v758_v30  ;;  %v679_v15 = vmax.f32 %v2085_v24, 0.0  ;;  %vm919_vm7 = vcmp.gt.f32.partialorder %v2085_v24, 20.0 }
 0x175   :  { %v770_v29 = vmul.f32 %v1633_v18, %v769_v33  ;;  %v900_v45 = vadd.f32 %v764_v35, %v676_v40 }
 0x176   :  { %v711_v31 = vsub.f32 0.0, %v695_v28 }
 0x177   :  { %v932_v51 = vsel %vm916_vm2, %v2076_v55, %v900_v45 }
 0x178   :  { %v1637_v34 = vpop.eup %1636  ;;  %v730_v19 = vmul.f32 1.442695, %v711_v31 }
 0x179   :  { %v1639_v38 = vpop.eup %1638  ;;  %v646_v41 = vpop.f32.mrf.mxu1  ;;  %v774_v42 = vadd.f32 1.0, %v1637_v34  ;;  %v777_v50 = vmul.f32 -0.5, %v1637_v34  ;;  %v780_v48 = vand.u32 2147483647, %v1637_v34 }
 0x17a   :  { %1640 = vpow2.f32 %v730_v19  ;;  %v2090_v9 = vadd.f32 %v2073_v63, %v646_v41  ;;  %v767_v43 = vmul.f32 0.6931472, %v1639_v38 }
 0x17b   :  { %1642 = vlog2.f32 %v774_v42  ;;  %v778_v39 = vadd.f32 1.0, %v777_v50  ;;  %vm781_vm4 = vcmp.lt.f32.partialorder %v780_v48, 0.0004427343 }
 0x17c   :  { %v696_v47 = vand.u32 2147483647, %v2090_v9  ;;  %v773_v49 = vsel %vm772_vm1, %v770_v29, %v767_v43  ;;  %vm920_vm10 = vcmp.gt.f32.partialorder %v2090_v9, 20.0 }
 0x17d   :  { %v901_v17 = vadd.f32 %v773_v49, %v677_v44  ;;  %v779_v4 = vmul.f32 %v1637_v34, %v778_v39 }
 0x17e   :  { %v712_v36 = vsub.f32 0.0, %v696_v47  ;;  %v680_v47 = vmax.f32 %v2090_v9, 0.0 }
 0x17f   :  { %v933_v52 = vsel %vm917_vm3, %v639_v7, %v901_v17 }
 0x180   :  { %v1641_v53 = vpop.eup %1640  ;;  %v732_v54 = vmul.f32 1.442695, %v712_v36  ;;  %v948_v56 = vpack.c.bf16 %v933_v52, %v932_v51 }
 0x181   :  { %v1643_v58 = vpop.eup %1642  ;;  %v648_v59 = vpop.f32.mrf.mxu1  ;;  %v783_v60 = vadd.f32 1.0, %v1641_v53  ;;  %v786_v62 = vmul.f32 -0.5, %v1641_v53  ;;  %v789_v37 = vand.u32 2147483647, %v1641_v53 }
 0x182   :  { %1644 = vpow2.f32 %v732_v54  ;;  %v2096_v61 = vadd.f32 %v2073_v63, %v648_v59  ;;  %1032 = vmatmul.bf16.vlgmr.msra.gmra.mxu2 %v948_v56  ;;  %v776_v3 = vmul.f32 0.6931472, %v1643_v58 }
 0x183   :  { %1646 = vlog2.f32 %v783_v60  ;;  %v787_v5 = vadd.f32 1.0, %v786_v62  ;;  %vm790_vm5 = vcmp.lt.f32.partialorder %v789_v37, 0.0004427343 }
 0x184   :  { %v697_v2 = vand.u32 2147483647, %v2096_v61  ;;  %v782_v7 = vsel %vm781_vm4, %v779_v4, %v776_v3  ;;  %v681_v52 = vmax.f32 %v2096_v61, 0.0  ;;  %vm921_vm11 = vcmp.gt.f32.partialorder %v2096_v61, 20.0 }
 0x185   :  { %v788_v0 = vmul.f32 %v1641_v53, %v787_v5  ;;  %v902_v16 = vadd.f32 %v782_v7, %v678_v10 }
 0x186   :  { %v713_v55 = vsub.f32 0.0, %v697_v2 }
 0x187   :  { %v934_v25 = vsel %vm918_vm6, %v2081_v14, %v902_v16 }
 0x188   :  { %v1645_v6 = vpop.eup %1644  ;;  %v734_v57 = vmul.f32 1.442695, %v713_v55 }
 0x189   :  { %v1647_v8 = vpop.eup %1646  ;;  %v651_v11 = vpop.f32.mrf.mxu1  ;;  %v792_v12 = vadd.f32 1.0, %v1645_v6  ;;  %v795_v23 = vmul.f32 -0.5, %v1645_v6  ;;  %v798_v35 = vand.u32 2147483647, %v1645_v6 }
 0x18a   :  { %1648 = vpow2.f32 %v734_v57  ;;  %v2101_v13 = vadd.f32 %v2073_v63, %v651_v11  ;;  %v785_v46 = vmul.f32 0.6931472, %v1647_v8 }
 0x18b   :  { %1650 = vlog2.f32 %v792_v12  ;;  %v796_v34 = vadd.f32 1.0, %v795_v23  ;;  %vm799_vm8 = vcmp.lt.f32.partialorder %v798_v35, 0.0004427343 }
 0x18c   :  { %v698_v18 = vand.u32 2147483647, %v2101_v13  ;;  %v791_v20 = vsel %vm790_vm5, %v788_v0, %v785_v46  ;;  %vm922_vm14 = vcmp.gt.f32.partialorder %v2101_v13, 20.0 }
 0x18d   :  { %v903_v21 = vadd.f32 %v791_v20, %v679_v15 }
 0x18e   :  { %v714_v22 = vsub.f32 0.0, %v698_v18  ;;  %v682_v18 = vmax.f32 %v2101_v13, 0.0 }
 0x18f   :  { %v935_v26 = vsel %vm919_vm7, %v2085_v24, %v903_v21  ;;  %v797_v24 = vmul.f32 %v1645_v6, %v796_v34 }
 0x190   :  { %v1649_v27 = vpop.eup %1648  ;;  %v736_v28 = vmul.f32 1.442695, %v714_v22  ;;  %v949_v30 = vpack.c.bf16 %v935_v26, %v934_v25 }
 0x191   :  { %v1651_v31 = vpop.eup %1650  ;;  %v653_v32 = vpop.f32.mrf.mxu1  ;;  %v801_v33 = vadd.f32 1.0, %v1649_v27  ;;  %v804_v19 = vmul.f32 -0.5, %v1649_v27  ;;  %v807_v42 = vand.u32 2147483647, %v1649_v27 }
 0x192   :  { %1652 = vpow2.f32 %v736_v28  ;;  %v2110_v1 = vadd.f32 %v2073_v63, %v653_v32  ;;  %1037 = vmatmul.bf16.gmra.mxu2 %v949_v30  ;;  %v794_v14 = vmul.f32 0.6931472, %v1651_v31 }
 0x193   :  { %1654 = vlog2.f32 %v801_v33  ;;  %v805_v41 = vadd.f32 1.0, %v804_v19  ;;  %vm808_vm9 = vcmp.lt.f32.partialorder %v807_v42, 0.0004427343 }
 0x194   :  { %v699_v38 = vand.u32 2147483647, %v2110_v1  ;;  %v800_v44 = vsel %vm799_vm8, %v797_v24, %v794_v14  ;;  %v683_v26 = vmax.f32 %v2110_v1, 0.0  ;;  %vm923_vm15 = vcmp.gt.f32.partialorder %v2110_v1, 20.0 }
 0x195   :  { %v806_v51 = vmul.f32 %v1649_v27, %v805_v41  ;;  %v904_v53 = vadd.f32 %v800_v44, %v680_v47 }
 0x196   :  { %v715_v40 = vsub.f32 0.0, %v699_v38 }
 0x197   :  { %v936_v39 = vsel %vm920_vm10, %v2090_v9, %v904_v53 }
 0x198   :  { %v1653_v43 = vpop.eup %1652  ;;  %v738_v29 = vmul.f32 1.442695, %v715_v40 }
 0x199   :  { %v1655_v45 = vpop.eup %1654  ;;  %v656_v49 = vpop.f32.mrf.mxu1  ;;  %v810_v17 = vadd.f32 1.0, %v1653_v43  ;;  %v813_v60 = vmul.f32 -0.5, %v1653_v43  ;;  %v816_v7 = vand.u32 2147483647, %v1653_v43 }
 0x19a   :  { %1656 = vpow2.f32 %v738_v29  ;;  %v2115_v36 = vadd.f32 %v2073_v63, %v656_v49  ;;  %v803_v50 = vmul.f32 0.6931472, %v1655_v45 }
 0x19b   :  { %1658 = vlog2.f32 %v810_v17  ;;  %v814_v6 = vadd.f32 1.0, %v813_v60  ;;  %vm817_vm12 = vcmp.lt.f32.partialorder %v816_v7, 0.0004427343 }
 0x19c   :  { %v700_v54 = vand.u32 2147483647, %v2115_v36  ;;  %v809_v56 = vsel %vm808_vm9, %v806_v51, %v803_v50  ;;  %vm924_vm2 = vcmp.gt.f32.partialorder %v2115_v36, 20.0 }
 0x19d   :  { %v905_v58 = vadd.f32 %v809_v56, %v681_v52 }
 0x19e   :  { %v716_v59 = vsub.f32 0.0, %v700_v54  ;;  %v684_v54 = vmax.f32 %v2115_v36, 0.0 }
 0x19f   :  { %v937_v62 = vsel %vm921_vm11, %v2096_v61, %v905_v58  ;;  %v815_v61 = vmul.f32 %v1653_v43, %v814_v6 }
 0x1a0   :  { %v1657_v48 = vpop.eup %1656  ;;  %v740_v2 = vmul.f32 1.442695, %v716_v59  ;;  %v950_v3 = vpack.c.bf16 %v937_v62, %v936_v39 }
 0x1a1   :  { %v1659_v55 = vpop.eup %1658  ;;  %v658_v4 = vpop.f32.mrf.mxu1  ;;  %v819_v5 = vadd.f32 1.0, %v1657_v48  ;;  %v822_v57 = vmul.f32 -0.5, %v1657_v48  ;;  %v825_v12 = vand.u32 2147483647, %v1657_v48 }
 0x1a2   :  { %1660 = vpow2.f32 %v740_v2  ;;  %v2124_v37 = vadd.f32 %v2073_v63, %v658_v4  ;;  %1042 = vmatmul.bf16.gmra.mxu2 %v950_v3  ;;  %v812_v9 = vmul.f32 0.6931472, %v1659_v55 }
 0x1a3   :  { %1662 = vlog2.f32 %v819_v5  ;;  %v823_v11 = vadd.f32 1.0, %v822_v57  ;;  %vm826_vm13 = vcmp.lt.f32.partialorder %v825_v12, 0.0004427343 }
 0x1a4   :  { %v701_v8 = vand.u32 2147483647, %v2124_v37  ;;  %v818_v15 = vsel %vm817_vm12, %v815_v61, %v812_v9  ;;  %v685_v62 = vmax.f32 %v2124_v37, 0.0  ;;  %vm925_vm3 = vcmp.gt.f32.partialorder %v2124_v37, 20.0 }
 0x1a5   :  { %v824_v25 = vmul.f32 %v1657_v48, %v823_v11  ;;  %v906_v27 = vadd.f32 %v818_v15, %v682_v18 }
 0x1a6   :  { %v717_v10 = vsub.f32 0.0, %v701_v8 }
 0x1a7   :  { %v938_v34 = vsel %vm922_vm14, %v2101_v13, %v906_v27 }
 0x1a8   :  { %v1661_v46 = vpop.eup %1660  ;;  %v742_v0 = vmul.f32 1.442695, %v717_v10 }
 0x1a9   :  { %v1663_v16 = vpop.eup %1662  ;;  %v661_v20 = vpop.f32.mrf.mxu1  ;;  %v828_v21 = vadd.f32 1.0, %v1661_v46  ;;  %v831_v33 = vmul.f32 -0.5, %v1661_v46  ;;  %v834_v44 = vand.u32 2147483647, %v1661_v46 }
 0x1aa   :  { %1664 = vpow2.f32 %v742_v0  ;;  %v2129_v22 = vadd.f32 %v2073_v63, %v661_v20  ;;  %v821_v23 = vmul.f32 0.6931472, %v1663_v16 }
 0x1ab   :  { %1666 = vlog2.f32 %v828_v21  ;;  %v832_v43 = vadd.f32 1.0, %v831_v33  ;;  %vm835_vm0 = vcmp.lt.f32.partialorder %v834_v44, 0.0004427343 }
 0x1ac   :  { %v702_v28 = vand.u32 2147483647, %v2129_v22  ;;  %v827_v30 = vsel %vm826_vm13, %v824_v25, %v821_v23  ;;  %vm926_vm6 = vcmp.gt.f32.partialorder %v2129_v22, 20.0 }
 0x1ad   :  { %v907_v31 = vadd.f32 %v827_v30, %v683_v26 }
 0x1ae   :  { %v718_v32 = vsub.f32 0.0, %v702_v28  ;;  %v686_v28 = vmax.f32 %v2129_v22, 0.0 }
 0x1af   :  { %v939_v19 = vsel %vm923_vm15, %v2110_v1, %v907_v31  ;;  %v833_v1 = vmul.f32 %v1661_v46, %v832_v43 }
 0x1b0   :  { %v1665_v35 = vpop.eup %1664  ;;  %v744_v38 = vmul.f32 1.442695, %v718_v32  ;;  %v951_v14 = vpack.c.bf16 %v939_v19, %v938_v34 }
 0x1b1   :  { %v1667_v40 = vpop.eup %1666  ;;  %v663_v24 = vpop.f32.mrf.mxu1  ;;  %v837_v41 = vadd.f32 1.0, %v1665_v35  ;;  %v840_v29 = vmul.f32 -0.5, %v1665_v35  ;;  %v843_v17 = vand.u32 2147483647, %v1665_v35 }
 0x1b2   :  { %1668 = vpow2.f32 %v744_v38  ;;  %v2138_v42 = vadd.f32 %v2073_v63, %v663_v24  ;;  %1047 = vmatmul.bf16.gmra.mxu2 %v951_v14  ;;  %v830_v13 = vmul.f32 0.6931472, %v1667_v40 }
 0x1b3   :  { %1670 = vlog2.f32 %v837_v41  ;;  %v841_v49 = vadd.f32 1.0, %v840_v29  ;;  %vm844_vm1 = vcmp.lt.f32.partialorder %v843_v17, 0.0004427343 }
 0x1b4   :  { %v703_v45 = vand.u32 2147483647, %v2138_v42  ;;  %v836_v52 = vsel %vm835_vm0, %v833_v1, %v830_v13  ;;  %v687_v19 = vmax.f32 %v2138_v42, 0.0  ;;  %vm927_vm7 = vcmp.gt.f32.partialorder %v2138_v42, 20.0 }
 0x1b5   :  { %v842_v39 = vmul.f32 %v1665_v35, %v841_v49  ;;  %v908_v48 = vadd.f32 %v836_v52, %v684_v54 }
 0x1b6   :  { %v719_v47 = vsub.f32 0.0, %v703_v45 }
 0x1b7   :  { %v940_v6 = vsel %vm924_vm2, %v2115_v36, %v908_v48 }
 0x1b8   :  { %v1669_v50 = vpop.eup %1668  ;;  %v746_v51 = vmul.f32 1.442695, %v719_v47 }
 0x1b9   :  { %v1671_v53 = vpop.eup %1670  ;;  %v666_v56 = vpop.f32.mrf.mxu1  ;;  %v846_v58 = vadd.f32 1.0, %v1669_v50  ;;  %v849_v5 = vmul.f32 -0.5, %v1669_v50  ;;  %v852_v15 = vand.u32 2147483647, %v1669_v50 }
 0x1ba   :  { %1672 = vpow2.f32 %v746_v51  ;;  %v2143_v59 = vadd.f32 %v2073_v63, %v666_v56  ;;  %v839_v60 = vmul.f32 0.6931472, %v1671_v53 }
 0x1bb   :  { %1674 = vlog2.f32 %v846_v58  ;;  %v850_v46 = vadd.f32 1.0, %v849_v5  ;;  %vm853_vm4 = vcmp.lt.f32.partialorder %v852_v15, 0.0004427343 }
 0x1bc   :  { %v704_v2 = vand.u32 2147483647, %v2143_v59  ;;  %v845_v3 = vsel %vm844_vm1, %v842_v39, %v839_v60  ;;  %vm928_vm10 = vcmp.gt.f32.partialorder %v2143_v59, 20.0 }
 0x1bd   :  { %v909_v55 = vadd.f32 %v845_v3, %v685_v62 }
 0x1be   :  { %v720_v4 = vsub.f32 0.0, %v704_v2  ;;  %v688_v2 = vmax.f32 %v2143_v59, 0.0 }
 0x1bf   :  { %v941_v57 = vsel %vm925_vm3, %v2124_v37, %v909_v55  ;;  %v851_v37 = vmul.f32 %v1669_v50, %v850_v46 }
 0x1c0   :  { %v1673_v7 = vpop.eup %1672  ;;  %v748_v8 = vmul.f32 1.442695, %v720_v4  ;;  %v952_v9 = vpack.c.bf16 %v941_v57, %v940_v6 }
 0x1c1   :  { %v1675_v10 = vpop.eup %1674  ;;  %v668_v61 = vpop.f32.mrf.mxu1  ;;  %v855_v11 = vadd.f32 1.0, %v1673_v7  ;;  %v858_v0 = vmul.f32 -0.5, %v1673_v7  ;;  %v861_v21 = vand.u32 2147483647, %v1673_v7 }
 0x1c2   :  { %1676 = vpow2.f32 %v748_v8  ;;  %v2152_v12 = vadd.f32 %v2073_v63, %v668_v61  ;;  %1052 = vmatmul.bf16.gmra.mxu2 %v952_v9  ;;  %v848_v36 = vmul.f32 0.6931472, %v1675_v10 }
 0x1c3   :  { %1678 = vlog2.f32 %v855_v11  ;;  %v859_v20 = vadd.f32 1.0, %v858_v0  ;;  %vm862_vm5 = vcmp.lt.f32.partialorder %v861_v21, 0.0004427343 }
 0x1c4   :  { %v705_v16 = vand.u32 2147483647, %v2152_v12  ;;  %v854_v26 = vsel %vm853_vm4, %v851_v37, %v848_v36  ;;  %v689_v4 = vmax.f32 %v2152_v12, 0.0  ;;  %vm929_vm11 = vcmp.gt.f32.partialorder %v2152_v12, 20.0 }
 0x1c5   :  { %v860_v34 = vmul.f32 %v1673_v7, %v859_v20  ;;  %v910_v35 = vadd.f32 %v854_v26, %v686_v28 }
 0x1c6   :  { %v721_v18 = vsub.f32 0.0, %v705_v16 }
 0x1c7   :  { %v942_v43 = vsel %vm926_vm6, %v2129_v22, %v910_v35 }
 0x1c8   :  { %v1677_v23 = vpop.eup %1676  ;;  %v750_v25 = vmul.f32 1.442695, %v721_v18 }
 0x1c9   :  { %v1679_v27 = vpop.eup %1678  ;;  %v671_v30 = vpop.f32.mrf.mxu1  ;;  %v864_v31 = vadd.f32 1.0, %v1677_v23  ;;  %v867_v41 = vmul.f32 -0.5, %v1677_v23  ;;  %v870_v52 = vand.u32 2147483647, %v1677_v23 }
 0x1ca   :  { %1680 = vpow2.f32 %v750_v25  ;;  %v2157_v32 = vadd.f32 %v2073_v63, %v671_v30  ;;  %v857_v33 = vmul.f32 0.6931472, %v1679_v27 }
 0x1cb   :  { %1682 = vlog2.f32 %v864_v31  ;;  %v868_v50 = vadd.f32 1.0, %v867_v41  ;;  %vm871_vm8 = vcmp.lt.f32.partialorder %v870_v52, 0.0004427343 }
 0x1cc   :  { %v706_v38 = vand.u32 2147483647, %v2157_v32  ;;  %v863_v14 = vsel %vm862_vm5, %v860_v34, %v857_v33  ;;  %vm930_vm14 = vcmp.gt.f32.partialorder %v2157_v32, 20.0 }
 0x1cd   :  { %v911_v40 = vadd.f32 %v863_v14, %v687_v19  ;;  %v869_v22 = vmul.f32 %v1677_v23, %v868_v50  ;;  %v2178_v19 = vld [vmem:[%s2373_s6] ss:$0 sm:$0xff] }
 0x1ce   :  { %v722_v24 = vsub.f32 0.0, %v706_v38 }
 0x1cf   :  { %v943_v29 = vsel %vm927_vm7, %v2138_v42, %v911_v40 }
 0x1d0   :  { %v1681_v44 = vpop.eup %1680  ;;  %v752_v45 = vmul.f32 1.442695, %v722_v24  ;;  %v953_v13 = vpack.c.bf16 %v943_v29, %v942_v43 }
 0x1d1   :  { %v1683_v47 = vpop.eup %1682  ;;  %v673_v1 = vpop.f32.mrf.mxu1  ;;  %v873_v49 = vadd.f32 1.0, %v1681_v44  ;;  %v876_v51 = vmul.f32 -0.5, %v1681_v44  ;;  %v879_v42 = vand.u32 2147483647, %v1681_v44 }
 0x1d2   :  { %1684 = vpow2.f32 %v752_v45  ;;  %v674_v17 = vadd.f32 %v2073_v63, %v673_v1  ;;  %1057 = vmatmul.bf16.gmra.mxu2 %v953_v13  ;;  %v866_v54 = vmul.f32 0.6931472, %v1683_v47 }
 0x1d3   :  { %1686 = vlog2.f32 %v873_v49  ;;  %v877_v58 = vadd.f32 1.0, %v876_v51  ;;  %vm880_vm9 = vcmp.lt.f32.partialorder %v879_v42, 0.0004427343 }
 0x1d4   :  { %v707_v53 = vand.u32 2147483647, %v674_v17  ;;  %v872_v62 = vsel %vm871_vm8, %v869_v22, %v866_v54  ;;  %v691_v26 = vmax.f32 %v674_v17, 0.0  ;;  %vm931_vm15 = vcmp.gt.f32.partialorder %v674_v17, 20.0 }
 0x1d5   :  { %v878_v55 = vmul.f32 %v1681_v44, %v877_v58  ;;  %v912_v5 = vadd.f32 %v872_v62, %v688_v2 }
 0x1d6   :  { %v723_v56 = vsub.f32 0.0, %v707_v53 }
 0x1d7   :  { %v944_v8 = vsel %vm928_vm10, %v2143_v59, %v912_v5  ;;  %v690_v59 = vmax.f32 %v2157_v32, 0.0 }
 0x1d8   :  { %v1685_v60 = vpop.eup %1684  ;;  %v754_v39 = vmul.f32 1.442695, %v723_v56 }
 0x1d9   :  { %v1687_v48 = vpop.eup %1686  ;;  %v882_v3 = vadd.f32 1.0, %v1685_v60  ;;  %v885_v7 = vmul.f32 -0.5, %v1685_v60  ;;  %v888_v16 = vand.u32 2147483647, %v1685_v60 }
 0x1da   :  { %1688 = vpow2.f32 %v754_v39  ;;  %v875_v63 = vmul.f32 0.6931472, %v1687_v48 }
 0x1db   :  { %1690 = vlog2.f32 %v882_v3  ;;  %v886_v0 = vadd.f32 1.0, %v885_v7  ;;  %vm889_vm12 = vcmp.lt.f32.partialorder %v888_v16, 0.0004427343 }
 0x1dc   :  { %v881_v6 = vsel %vm880_vm9, %v878_v55, %v875_v63 }
 0x1dd   :  { %v913_v57 = vadd.f32 %v881_v6, %v689_v4  ;;  %v887_v18 = vmul.f32 %v1685_v60, %v886_v0 }
 0x1df   :  { %v945_v9 = vsel %vm929_vm11, %v2152_v12, %v913_v57 }
 0x1e0   :  { %v1689_v10 = vpop.eup %1688  ;;  %v954_v61 = vpack.c.bf16 %v945_v9, %v944_v8 }
 0x1e1   :  { %v1691_v11 = vpop.eup %1690  ;;  %v891_v46 = vadd.f32 1.0, %v1689_v10  ;;  %v894_v15 = vmul.f32 -0.5, %v1689_v10  ;;  %v897_v20 = vand.u32 2147483647, %v1689_v10 }
 0x1e2   :  { %1062 = vmatmul.bf16.gmra.mxu2 %v954_v61  ;;  %v884_v36 = vmul.f32 0.6931472, %v1691_v11 }
 0x1e3   :  { %1692 = vlog2.f32 %v891_v46  ;;  %v895_v37 = vadd.f32 1.0, %v894_v15  ;;  %vm898_vm13 = vcmp.lt.f32.partialorder %v897_v20, 0.0004427343 }
 0x1e4   :  { %v890_v21 = vsel %vm889_vm12, %v887_v18, %v884_v36 }
 0x1e5   :  { %v896_v12 = vmul.f32 %v1689_v10, %v895_v37  ;;  %v914_v27 = vadd.f32 %v890_v21, %v690_v59 }
 0x1e7   :  { %v946_v31 = vsel %vm930_vm14, %v2157_v32, %v914_v27 }
 0x1e9   :  { %v1693_v23 = vpop.eup %1692 }
 0x1ea   :  { %v893_v25 = vmul.f32 0.6931472, %v1693_v23 }
 0x1ec   :  { %v899_v28 = vsel %vm898_vm13, %v896_v12, %v893_v25 }
 0x1ed   :  { %v915_v30 = vadd.f32 %v899_v28, %v691_v26 }
 0x1ef   :  { %v947_v33 = vsel %vm931_vm15, %v674_v17, %v915_v30 }
 0x1f0   :  { %v955_v34 = vpack.c.bf16 %v947_v33, %v946_v31 }
 0x1f2   :  { %1067 = vmatmul.bf16.gmra.mxu2 %v955_v34 }
 0x205   :  { %v1033_v35 = vpop.f32.mrf.mxu2 }
 0x206   :  { %v1034_v38 = vadd.f32 %v2178_v19, %v1033_v35 }
 0x208   :  { %v1089_v14 = vand.u32 2147483647, %v1034_v38  ;;  %v1073_v7 = vmax.f32 %v1034_v38, 0.0  ;;  %vm1313_vm2 = vcmp.gt.f32.partialorder %v1034_v38, 20.0 }
 0x20a   :  { %v1105_v40 = vsub.f32 0.0, %v1089_v14 }
 0x20c   :  { %v1121_v24 = vmul.f32 1.442695, %v1105_v40 }
 0x20d   :  { %v1035_v41 = vpop.f32.mrf.mxu2 }
 0x20e   :  { %1694 = vpow2.f32 %v1121_v24  ;;  %v1036_v43 = vadd.f32 %v2178_v19, %v1035_v41 }
 0x210   :  { %v1090_v29 = vand.u32 2147483647, %v1036_v43  ;;  %v1074_v46 = vmax.f32 %v1036_v43, 0.0  ;;  %vm1314_vm3 = vcmp.gt.f32.partialorder %v1036_v43, 20.0 }
 0x212   :  { %v1106_v32 = vsub.f32 0.0, %v1090_v29 }
 0x214   :  { %v1695_v44 = vpop.eup %1694  ;;  %v1123_v45 = vmul.f32 1.442695, %v1106_v32 }
 0x215   :  { %v1038_v13 = vpop.f32.mrf.mxu2  ;;  %v1153_v47 = vadd.f32 1.0, %v1695_v44  ;;  %v1156_v50 = vmul.f32 -0.5, %v1695_v44  ;;  %v1159_v60 = vand.u32 2147483647, %v1695_v44 }
 0x216   :  { %1696 = vpow2.f32 %v1123_v45  ;;  %v2183_v1 = vadd.f32 %v2178_v19, %v1038_v13 }
 0x217   :  { %1698 = vlog2.f32 %v1153_v47  ;;  %v1157_v58 = vadd.f32 1.0, %v1156_v50  ;;  %vm2190_vm0 = vcmp.lt.f32.partialorder %v1159_v60, 0.0004427343 }
 0x218   :  { %v1091_v49 = vand.u32 2147483647, %v2183_v1  ;;  %v1075_v45 = vmax.f32 %v2183_v1, 0.0  ;;  %vm1315_vm6 = vcmp.gt.f32.partialorder %v2183_v1, 20.0 }
 0x219   :  { %v1158_v2 = vmul.f32 %v1695_v44, %v1157_v58 }
 0x21a   :  { %v1107_v17 = vsub.f32 0.0, %v1091_v49 }
 0x21c   :  { %v1697_v51 = vpop.eup %1696  ;;  %v1125_v52 = vmul.f32 1.442695, %v1107_v17 }
 0x21d   :  { %v1699_v53 = vpop.eup %1698  ;;  %v1040_v54 = vpop.f32.mrf.mxu2  ;;  %v1162_v56 = vadd.f32 1.0, %v1697_v51  ;;  %v1165_v42 = vmul.f32 -0.5, %v1697_v51  ;;  %v1168_v55 = vand.u32 2147483647, %v1697_v51 }
 0x21e   :  { %1700 = vpow2.f32 %v1125_v52  ;;  %v2187_v22 = vadd.f32 %v2178_v19, %v1040_v54  ;;  %v1155_v62 = vmul.f32 0.6931472, %v1699_v53 }
 0x21f   :  { %1702 = vlog2.f32 %v1162_v56  ;;  %v1166_v3 = vadd.f32 1.0, %v1165_v42  ;;  %vm1169_vm1 = vcmp.lt.f32.partialorder %v1168_v55, 0.0004427343 }
 0x220   :  { %v1092_v39 = vand.u32 2147483647, %v2187_v22  ;;  %v1161_v6 = vsel %vm2190_vm0, %v1158_v2, %v1155_v62  ;;  %vm1316_vm7 = vcmp.gt.f32.partialorder %v2187_v22, 20.0 }
 0x221   :  { %v1167_v11 = vmul.f32 %v1697_v51, %v1166_v3  ;;  %v1297_v0 = vadd.f32 %v1161_v6, %v1073_v7  ;;  %v1076_v51 = vmax.f32 %v2187_v22, 0.0 }
 0x222   :  { %v1108_v48 = vsub.f32 0.0, %v1092_v39 }
 0x223   :  { %v2200_v20 = vsel %vm1313_vm2, %v1034_v38, %v1297_v0 }
 0x224   :  { %v1701_v4 = vpop.eup %1700  ;;  %v1127_v5 = vmul.f32 1.442695, %v1108_v48 }
 0x225   :  { %v1703_v57 = vpop.eup %1702  ;;  %v1043_v8 = vpop.f32.mrf.mxu2  ;;  %v1171_v9 = vadd.f32 1.0, %v1701_v4  ;;  %v1174_v37 = vmul.f32 -0.5, %v1701_v4  ;;  %v1177_v33 = vand.u32 2147483647, %v1701_v4 }
 0x226   :  { %1704 = vpow2.f32 %v1127_v5  ;;  %v2197_v10 = vadd.f32 %v2178_v19, %v1043_v8  ;;  %v1164_v61 = vmul.f32 0.6931472, %v1703_v57 }
 0x227   :  { %1706 = vlog2.f32 %v1171_v9  ;;  %v1175_v30 = vadd.f32 1.0, %v1174_v37  ;;  %vm2210_vm4 = vcmp.lt.f32.partialorder %v1177_v33, 0.0004427343 }
 0x228   :  { %v1093_v15 = vand.u32 2147483647, %v2197_v10  ;;  %v1170_v16 = vsel %vm1169_vm1, %v1167_v11, %v1164_v61  ;;  %vm1317_vm10 = vcmp.gt.f32.partialorder %v2197_v10, 20.0 }
 0x229   :  { %v1298_v36 = vadd.f32 %v1170_v16, %v1074_v46  ;;  %v1176_v14 = vmul.f32 %v1701_v4, %v1175_v30 }
 0x22a   :  { %v1109_v18 = vsub.f32 0.0, %v1093_v15 }
 0x22b   :  { %v2202_v21 = vsel %vm1314_vm3, %v1036_v43, %v1298_v36  ;;  %v1077_v36 = vmax.f32 %v2197_v10, 0.0 }
 0x22c   :  { %v1705_v23 = vpop.eup %1704  ;;  %v1129_v59 = vmul.f32 1.442695, %v1109_v18  ;;  %v1346_v25 = vpack.c.bf16 %v2202_v21, %v2200_v20 }
 0x22d   :  { %v1707_v12 = vpop.eup %1706  ;;  %v1045_v26 = vpop.f32.mrf.mxu2  ;;  %v1180_v27 = vadd.f32 1.0, %v1705_v23  ;;  %v1183_v31 = vmul.f32 -0.5, %v1705_v23  ;;  %v1186_v41 = vand.u32 2147483647, %v1705_v23 }
 0x22e   :  { %1708 = vpow2.f32 %v1129_v59  ;;  %v2207_v28 = vadd.f32 %v2178_v19, %v1045_v26  ;;  %v1173_v35 = vmul.f32 0.6931472, %v1707_v12 }
 0x22f   :  { %1710 = vlog2.f32 %v1180_v27  ;;  %v1184_v40 = vadd.f32 1.0, %v1183_v31  ;;  %vm1187_vm5 = vcmp.lt.f32.partialorder %v1186_v41, 0.0004427343 }
 0x230   :  { %v1094_v34 = vand.u32 2147483647, %v2207_v28  ;;  %v1179_v32 = vsel %vm2210_vm4, %v1176_v14, %v1173_v35  ;;  %v1078_v26 = vmax.f32 %v2207_v28, 0.0  ;;  %vm1318_vm11 = vcmp.gt.f32.partialorder %v2207_v28, 20.0 }
 0x231   :  { %v1185_v50 = vmul.f32 %v1705_v23, %v1184_v40  ;;  %v1299_v52 = vadd.f32 %v1179_v32, %v1075_v45 }
 0x232   :  { %v1110_v38 = vsub.f32 0.0, %v1094_v34 }
 0x233   :  { %v2225_v60 = vsel %vm1315_vm6, %v2183_v1, %v1299_v52 }
 0x234   :  { %v1709_v43 = vpop.eup %1708  ;;  %v1131_v29 = vmul.f32 1.442695, %v1110_v38 }
 0x235   :  { %v1711_v44 = vpop.eup %1710  ;;  %v1048_v13 = vpop.f32.mrf.mxu2  ;;  %v1189_v47 = vadd.f32 1.0, %v1709_v43  ;;  %v1192_v42 = vmul.f32 -0.5, %v1709_v43  ;;  %v1195_v57 = vand.u32 2147483647, %v1709_v43 }
 0x236   :  { %1712 = vpow2.f32 %v1131_v29  ;;  %v2218_v49 = vadd.f32 %v2178_v19, %v1048_v13  ;;  %v1182_v17 = vmul.f32 0.6931472, %v1711_v44 }
 0x237   :  { %1714 = vlog2.f32 %v1189_v47  ;;  %v1193_v5 = vadd.f32 1.0, %v1192_v42  ;;  %vm2236_vm8 = vcmp.lt.f32.partialorder %v1195_v57, 0.0004427343 }
 0x238   :  { %v1095_v53 = vand.u32 2147483647, %v2218_v49  ;;  %v1188_v54 = vsel %vm1187_vm5, %v1185_v50, %v1182_v17  ;;  %v1079_v42 = vmax.f32 %v2218_v49, 0.0  ;;  %vm1319_vm14 = vcmp.gt.f32.partialorder %v2218_v49, 20.0 }
 0x239   :  { %v1300_v56 = vadd.f32 %v1188_v54, %v1076_v51  ;;  %v1194_v8 = vmul.f32 %v1709_v43, %v1193_v5 }
 0x23a   :  { %v1111_v58 = vsub.f32 0.0, %v1095_v53 }
 0x23b   :  { %v2228_v39 = vsel %vm1316_vm7, %v2187_v22, %v1300_v56 }
 0x23c   :  { %v1713_v62 = vpop.eup %1712  ;;  %v1133_v48 = vmul.f32 1.442695, %v1111_v58  ;;  %v1347_v2 = vpack.c.bf16 %v2228_v39, %v2225_v60 }
 0x23d   :  { %v1715_v3 = vpop.eup %1714  ;;  %v1050_v63 = vpop.f32.mrf.mxu2  ;;  %v1198_v55 = vadd.f32 1.0, %v1713_v62  ;;  %v1201_v6 = vmul.f32 -0.5, %v1713_v62  ;;  %v1204_v11 = vand.u32 2147483647, %v1713_v62 }
 0x23e   :  { %1716 = vpow2.f32 %v1133_v48  ;;  %v2233_v4 = vadd.f32 %v2178_v19, %v1050_v63  ;;  %v1191_v22 = vmul.f32 0.6931472, %v1715_v3 }
 0x23f   :  { %1718 = vlog2.f32 %v1198_v55  ;;  %v1202_v9 = vadd.f32 1.0, %v1201_v6  ;;  %vm1205_vm9 = vcmp.lt.f32.partialorder %v1204_v11, 0.0004427343 }
 0x240   :  { %v1096_v1 = vand.u32 2147483647, %v2233_v4  ;;  %v1197_v15 = vsel %vm2236_vm8, %v1194_v8, %v1191_v22  ;;  %v1080_v55 = vmax.f32 %v2233_v4, 0.0  ;;  %vm1320_vm15 = vcmp.gt.f32.partialorder %v2233_v4, 20.0 }
 0x241   :  { %v1203_v12 = vmul.f32 %v1713_v62, %v1202_v9  ;;  %v1301_v27 = vadd.f32 %v1197_v15, %v1077_v36 }
 0x242   :  { %v1112_v7 = vsub.f32 0.0, %v1096_v1 }
 0x243   :  { %v2251_v38 = vsel %vm1317_vm10, %v2197_v10, %v1301_v27 }
 0x244   :  { %v1717_v46 = vpop.eup %1716  ;;  %v1135_v0 = vmul.f32 1.442695, %v1112_v7 }
 0x245   :  { %v1719_v16 = vpop.eup %1718  ;;  %v1053_v18 = vpop.f32.mrf.mxu2  ;;  %v1207_v37 = vadd.f32 1.0, %v1717_v46  ;;  %v1210_v35 = vmul.f32 -0.5, %v1717_v46  ;;  %v1213_v47 = vand.u32 2147483647, %v1717_v46 }
 0x246   :  { %1720 = vpow2.f32 %v1135_v0  ;;  %v2244_v23 = vadd.f32 %v2178_v19, %v1053_v18  ;;  %v1200_v59 = vmul.f32 0.6931472, %v1719_v16 }
 0x247   :  { %1722 = vlog2.f32 %v1207_v37  ;;  %v1211_v45 = vadd.f32 1.0, %v1210_v35  ;;  %vm1214_vm12 = vcmp.lt.f32.partialorder %v1213_v47, 0.0004427343 }
 0x248   :  { %v1097_v30 = vand.u32 2147483647, %v2244_v23  ;;  %v1206_v31 = vsel %vm1205_vm9, %v1203_v12, %v1200_v59  ;;  %vm1321_vm2 = vcmp.gt.f32.partialorder %v2244_v23, 20.0 }
 0x249   :  { %v1302_v33 = vadd.f32 %v1206_v31, %v1078_v26 }
 0x24a   :  { %v1113_v34 = vsub.f32 0.0, %v1097_v30 }
 0x24b   :  { %v2254_v14 = vsel %vm1318_vm11, %v2207_v28, %v1302_v33  ;;  %v1212_v28 = vmul.f32 %v1717_v46, %v1211_v45 }
 0x24c   :  { %v1721_v40 = vpop.eup %1720  ;;  %v1137_v24 = vmul.f32 1.442695, %v1113_v34  ;;  %v1348_v41 = vpack.c.bf16 %v2254_v14, %v2251_v38 }
 0x24d   :  { %v1723_v43 = vpop.eup %1722  ;;  %v1055_v29 = vpop.f32.mrf.mxu2  ;;  %v1216_v32 = vadd.f32 1.0, %v1721_v40  ;;  %v1219_v13 = vmul.f32 -0.5, %v1721_v40  ;;  %v1222_v52 = vand.u32 2147483647, %v1721_v40 }
 0x24e   :  { %1724 = vpow2.f32 %v1137_v24  ;;  %v1056_v44 = vadd.f32 %v2178_v19, %v1055_v29  ;;  %v1209_v17 = vmul.f32 0.6931472, %v1723_v43 }
 0x24f   :  { %1726 = vlog2.f32 %v1216_v32  ;;  %v1220_v51 = vadd.f32 1.0, %v1219_v13  ;;  %vm1223_vm13 = vcmp.lt.f32.partialorder %v1222_v52, 0.0004427343 }
 0x250   :  { %v1098_v10 = vand.u32 2147483647, %v1056_v44  ;;  %v1215_v56 = vsel %vm1214_vm12, %v1212_v28, %v1209_v17  ;;  %v1082_v31 = vmax.f32 %v1056_v44, 0.0  ;;  %vm1322_vm3 = vcmp.gt.f32.partialorder %v1056_v44, 20.0 }
 0x251   :  { %v1221_v63 = vmul.f32 %v1721_v40, %v1220_v51  ;;  %v1303_v5 = vadd.f32 %v1215_v56, %v1079_v42 }
 0x252   :  { %v1114_v50 = vsub.f32 0.0, %v1098_v10 }
 0x253   :  { %v2264_v22 = vsel %vm1319_vm14, %v2218_v49, %v1303_v5 }
 0x254   :  { %v1725_v53 = vpop.eup %1724  ;;  %v1139_v54 = vmul.f32 1.442695, %v1114_v50 }
 0x255   :  { %v1727_v58 = vpop.eup %1726  ;;  %v1058_v62 = vpop.f32.mrf.mxu2  ;;  %v1225_v48 = vadd.f32 1.0, %v1725_v53  ;;  %v1228_v1 = vmul.f32 -0.5, %v1725_v53  ;;  %v1231_v16 = vand.u32 2147483647, %v1725_v53 }
 0x256   :  { %1728 = vpow2.f32 %v1139_v54  ;;  %v1218_v3 = vmul.f32 0.6931472, %v1727_v58  ;;  %v2288_v47 = vadd.f32 %v2178_v19, %v1058_v62 }
 0x257   :  { %1730 = vlog2.f32 %v1225_v48  ;;  %v1229_v0 = vadd.f32 1.0, %v1228_v1  ;;  %vm1232_vm0 = vcmp.lt.f32.partialorder %v1231_v16, 0.0004427343 }
 0x258   :  { %v1224_v6 = vsel %vm1223_vm13, %v1221_v63, %v1218_v3  ;;  %v1099_v51 = vand.u32 2147483647, %v2288_v47 }
 0x259   :  { %v1304_v57 = vadd.f32 %v1224_v6, %v1080_v55  ;;  %v1230_v18 = vmul.f32 %v1725_v53, %v1229_v0 }
 0x25a   :  { %v1115_v42 = vsub.f32 0.0, %v1099_v51 }
 0x25b   :  { %v2267_v7 = vsel %vm1320_vm15, %v2233_v4, %v1304_v57  ;;  %v1081_v4 = vmax.f32 %v2244_v23, 0.0  ;;  %vm1323_vm15 = vcmp.gt.f32.partialorder %v2288_v47, 20.0 }
 0x25c   :  { %v1729_v8 = vpop.eup %1728  ;;  %v1349_v9 = vpack.c.bf16 %v2267_v7, %v2264_v22  ;;  %v1141_v5 = vmul.f32 1.442695, %v1115_v42  ;;  %v1345_v22 = vld [vmem:[%s2374_s7] sm:$0x1] }
 0x25d   :  { %v1731_v61 = vpop.eup %1730  ;;  %v1060_v11 = vpop.f32.mrf.mxu2  ;;  %v1234_v46 = vadd.f32 1.0, %v1729_v8  ;;  %v1237_v15 = vmul.f32 -0.5, %v1729_v8  ;;  %v1240_v49 = vand.u32 2147483647, %v1729_v8 }
 0x25e   :  { %v1227_v36 = vmul.f32 0.6931472, %v1731_v61  ;;  %v2295_v17 = vadd.f32 %v2178_v19, %v1060_v11 }
 0x25f   :  { %1732 = vlog2.f32 %v1234_v46  ;;  %v1238_v37 = vadd.f32 1.0, %v1237_v15  ;;  %vm1241_vm1 = vcmp.lt.f32.partialorder %v1240_v49, 0.0004427343 }
 0x260   :  { %v1233_v59 = vsel %vm1232_vm0, %v1230_v18, %v1227_v36  ;;  %v1100_v54 = vand.u32 2147483647, %v2295_v17  ;;  %vm1324_vm14 = vcmp.gt.f32.partialorder %v2295_v17, 20.0 }
 0x261   :  { %v1239_v30 = vmul.f32 %v1729_v8, %v1238_v37  ;;  %v1305_v33 = vadd.f32 %v1233_v59, %v1081_v4 }
 0x262   :  { %v1116_v63 = vsub.f32 0.0, %v1100_v54 }
 0x263   :  { %v2274_v40 = vsel %vm1321_vm2, %v2244_v23, %v1305_v33 }
 0x264   :  { %v1143_v1 = vmul.f32 1.442695, %v1116_v63 }
 0x265   :  { %v1733_v12 = vpop.eup %1732  ;;  %v1063_v26 = vpop.f32.mrf.mxu2 }
 0x266   :  { %v1236_v27 = vmul.f32 0.6931472, %v1733_v12  ;;  %v2284_v45 = vadd.f32 %v2178_v19, %v1063_v26 }
 0x268   :  { %v1242_v34 = vsel %vm1241_vm1, %v1239_v30, %v1236_v27  ;;  %v1101_v23 = vand.u32 2147483647, %v2284_v45  ;;  %vm1325_vm12 = vcmp.gt.f32.partialorder %v2284_v45, 20.0 }
 0x269   :  { %v1306_v35 = vadd.f32 %v1242_v34, %v1082_v31 }
 0x26a   :  { %v1117_v52 = vsub.f32 0.0, %v1101_v23 }
 0x26b   :  { %v2276_v24 = vsel %vm1322_vm3, %v1056_v44, %v1306_v35 }
 0x26c   :  { %v1350_v43 = vpack.c.bf16 %v2276_v24, %v2274_v40  ;;  %v1145_v62 = vmul.f32 1.442695, %v1117_v52 }
 0x26d   :  { %v1065_v29 = vpop.f32.mrf.mxu2 }
 0x26e   :  { %v2281_v32 = vadd.f32 %v2178_v19, %v1065_v29 }
 0x270   :  { %v1102_v13 = vand.u32 2147483647, %v2281_v32  ;;  %vm1326_vm10 = vcmp.gt.f32.partialorder %v2281_v32, 20.0 }
 0x272   :  { %v1118_v50 = vsub.f32 0.0, %v1102_v13 }
 0x274   :  { %v1147_v56 = vmul.f32 1.442695, %v1118_v50 }
 0x275   :  { %v1068_v10 = vpop.f32.mrf.mxu2 }
 0x276   :  { %v2292_v44 = vadd.f32 %v2178_v19, %v1068_v10 }
 0x278   :  { %v1103_v28 = vand.u32 2147483647, %v2292_v44  ;;  %v1087_v52 = vmax.f32 %v2292_v44, 0.0  ;;  %vm1327_vm7 = vcmp.gt.f32.partialorder %v2292_v44, 20.0 }
 0x27a   :  { %v1119_v53 = vsub.f32 0.0, %v1103_v28 }
 0x27c   :  { %v1149_v58 = vmul.f32 1.442695, %v1119_v53 }
 0x27d   :  { %v1070_v48 = vpop.f32.mrf.mxu2 }
 0x27e   :  { %1734 = vpow2.f32 %v1149_v58  ;;  %v2301_v3 = vadd.f32 %v2178_v19, %v1070_v48 }
 0x27f   :  { %1736 = vpow2.f32 %v1147_v56 }
 0x280   :  { %v1104_v55 = vand.u32 2147483647, %v2301_v3  ;;  %1738 = vpow2.f32 %v1145_v62  ;;  %v1088_v62 = vmax.f32 %v2301_v3, 0.0  ;;  %vm1328_vm8 = vcmp.gt.f32.partialorder %v2301_v3, 20.0 }
 0x281   :  { %1740 = vpow2.f32 %v1141_v5 }
 0x282   :  { %v1120_v6 = vsub.f32 0.0, %v1104_v55 }
 0x284   :  { %v1735_v57 = vpop.eup %1734  ;;  %v1151_v8 = vmul.f32 1.442695, %v1120_v6 }
 0x285   :  { %v1279_v61 = vadd.f32 1.0, %v1735_v57  ;;  %v1737_v11 = vpop.eup %1736  ;;  %v1282_v19 = vmul.f32 -0.5, %v1735_v57  ;;  %v1285_v4 = vand.u32 2147483647, %v1735_v57 }
 0x286   :  { %1742 = vpow2.f32 %v1151_v8  ;;  %v1739_v46 = vpop.eup %1738  ;;  %v1270_v0 = vadd.f32 1.0, %v1737_v11  ;;  %v1273_v27 = vmul.f32 -0.5, %v1737_v11  ;;  %v1276_v53 = vand.u32 2147483647, %v1737_v11 }
 0x287   :  { %1744 = vlog2.f32 %v1279_v61  ;;  %v1261_v15 = vadd.f32 1.0, %v1739_v46  ;;  %v2304_v16 = vpop.eup %1740  ;;  %v1283_v59 = vadd.f32 1.0, %v1282_v19  ;;  %v1264_v35 = vmul.f32 -0.5, %v1739_v46 }
 0x288   :  { %1746 = vpow2.f32 %v1143_v1  ;;  %v1243_v30 = vadd.f32 1.0, %v2304_v16  ;;  %vm2310_vm4 = vcmp.lt.f32.partialorder %v1285_v4, 0.0004427343  ;;  %v1274_v28 = vadd.f32 1.0, %v1273_v27 }
 0x289   :  { %1748 = vlog2.f32 %v1270_v0  ;;  %v1284_v33 = vmul.f32 %v1735_v57, %v1283_v59  ;;  %v1265_v58 = vadd.f32 1.0, %v1264_v35  ;;  %v1267_v63 = vand.u32 2147483647, %v1739_v46 }
 0x28a   :  { %1750 = vlog2.f32 %v1261_v15  ;;  %v1275_v6 = vmul.f32 %v1737_v11, %v1274_v28  ;;  %vm2319_vm6 = vcmp.lt.f32.partialorder %v1276_v53, 0.0004427343  ;;  %v1246_v61 = vmul.f32 -0.5, %v2304_v16 }
 0x28b   :  { %v1266_v19 = vmul.f32 %v1739_v46, %v1265_v58  ;;  %v1086_v11 = vmax.f32 %v2281_v32, 0.0  ;;  %vm1268_vm9 = vcmp.lt.f32.partialorder %v1267_v63, 0.0004427343 }
 0x28c   :  { %v1743_v36 = vpop.eup %1742  ;;  %v1247_v46 = vadd.f32 1.0, %v1246_v61 }
 0x28d   :  { %v1745_v18 = vpop.eup %1744  ;;  %v1288_v37 = vadd.f32 1.0, %v1743_v36  ;;  %v1291_v12 = vmul.f32 -0.5, %v1743_v36  ;;  %v1294_v23 = vand.u32 2147483647, %v1743_v36 }
 0x28e   :  { %v2306_v49 = vpop.eup %1746  ;;  %v1281_v26 = vmul.f32 0.6931472, %v1745_v18 }
 0x28f   :  { %1752 = vlog2.f32 %v1288_v37  ;;  %v1252_v31 = vadd.f32 1.0, %v2306_v49  ;;  %v1292_v34 = vadd.f32 1.0, %v1291_v12  ;;  %v1749_v29 = vpop.eup %1748  ;;  %vm1295_vm5 = vcmp.lt.f32.partialorder %v1294_v23, 0.0004427343 }
 0x290   :  { %v1751_v10 = vpop.eup %1750  ;;  %v1287_v50 = vsel %vm2310_vm4, %v1284_v33, %v1281_v26  ;;  %1754 = vlog2.f32 %v1243_v30  ;;  %v1272_v42 = vmul.f32 0.6931472, %v1749_v29  ;;  %v1255_v57 = vmul.f32 -0.5, %v2306_v49 }
 0x291   :  { %1756 = vlog2.f32 %v1252_v31  ;;  %v1293_v56 = vmul.f32 %v1743_v36, %v1292_v34  ;;  %v1311_v48 = vadd.f32 %v1287_v50, %v1087_v52  ;;  %v1263_v5 = vmul.f32 0.6931472, %v1751_v10 }
 0x292   :  { %v1278_v15 = vsel %vm2319_vm6, %v1275_v6, %v1272_v42  ;;  %v1256_v4 = vadd.f32 1.0, %v1255_v57  ;;  %v1085_v26 = vmax.f32 %v2284_v45, 0.0  ;;  %v1258_v30 = vand.u32 2147483647, %v2306_v49 }
 0x293   :  { %v1343_v18 = vsel %vm1327_vm7, %v2292_v44, %v1311_v48  ;;  %v1269_v12 = vsel %vm1268_vm9, %v1266_v19, %v1263_v5  ;;  %v1310_v27 = vadd.f32 %v1278_v15, %v1086_v11  ;;  %v1249_v34 = vand.u32 2147483647, %v2304_v16 }
 0x294   :  { %v1309_v33 = vadd.f32 %v1269_v12, %v1085_v26  ;;  %vm1259_vm11 = vcmp.lt.f32.partialorder %v1258_v30, 0.0004427343  ;;  %v1248_v29 = vmul.f32 %v2304_v16, %v1247_v46  ;;  %v1084_v23 = vmax.f32 %v2295_v17, 0.0 }
 0x295   :  { %v1753_v51 = vpop.eup %1752  ;;  %v1342_v35 = vsel %vm1326_vm10, %v2281_v32, %v1310_v27  ;;  %vm1250_vm13 = vcmp.lt.f32.partialorder %v1249_v34, 0.0004427343 }
 0x296   :  { %v1290_v54 = vmul.f32 0.6931472, %v1753_v51  ;;  %v1755_v0 = vpop.eup %1754  ;;  %v1341_v10 = vsel %vm1325_vm12, %v2284_v45, %v1309_v33  ;;  %v1083_v51 = vmax.f32 %v2288_v47, 0.0  ;;  %v1354_v45 = vld [vmem:[#allocation2] sm:$0x1] }
 0x297   :  { %v1757_v36 = vpop.eup %1756  ;;  %v1245_v44 = vmul.f32 0.6931472, %v1755_v0  ;;  %v1352_v50 = vpack.c.bf16 %v1342_v35, %v1341_v10 }
 0x298   :  { %v1296_v55 = vsel %vm1295_vm5, %v1293_v56, %v1290_v54  ;;  %v1254_v31 = vmul.f32 0.6931472, %v1757_v36  ;;  %v1892_v54 = vmov 0  }
 0x299   :  { %v1312_v1 = vadd.f32 %v1296_v55, %v1088_v62  ;;  %v1251_v28 = vsel %vm1250_vm13, %v1248_v29, %v1245_v44  ;;  %1562 = vset.pattern.permute.xlu0 %v1892_v54 }
 0x29a   :  { %1357 = vperm.xlu0 %1562, %v1354_v45  }
 0x29b   :  { %v1344_v37 = vsel %vm1328_vm8, %v2301_v3, %v1312_v1  ;;  %v1257_v3 = vmul.f32 %v2306_v49, %v1256_v4  ;;  %v1307_v49 = vadd.f32 %v1251_v28, %v1083_v51 }
 0x29c   :  { %v1353_v59 = vpack.c.bf16 %v1344_v37, %v1343_v18 }
 0x29d   :  { %v1260_v13 = vsel %vm1259_vm11, %v1257_v3, %v1254_v31  ;;  %v1339_v16 = vsel %vm1323_vm15, %v2288_v47, %v1307_v49 }
 0x29e   :  { %1361 = vmatpush.bf16.xpose.msra.mxu3 %v1353_v59  ;;  %v1308_v52 = vadd.f32 %v1260_v13, %v1084_v23 }
 0x2a0   :  { %v1340_v32 = vsel %vm1324_vm14, %v2295_v17, %v1308_v52 }
 0x2a1   :  { %v1351_v53 = vpack.c.bf16 %v1340_v32, %v1339_v16 }
 0x2a6   :  { %1362 = vmatpush.bf16.xpose.msra.mxu3 %v1352_v50 }
 0x2ae   :  { %1363 = vmatpush.bf16.xpose.msra.mxu3 %v1351_v53 }
 0x2b6   :  { %1364 = vmatpush.bf16.xpose.msra.mxu3 %v1350_v43 }
 0x2be   :  { %1365 = vmatpush.bf16.xpose.msra.mxu3 %v1349_v9 }
 0x2c6   :  { %1366 = vmatpush.bf16.xpose.msra.mxu3 %v1348_v41 }
 0x2ce   :  { %1367 = vmatpush.bf16.xpose.msra.mxu3 %v1347_v2 }
 0x2d6   :  { %1368 = vmatpush.bf16.xpose.msra.mxu3 %v1346_v25 }
 0x2dd   :  { %1369 = vmatmul.bf16.vlgmr.msra.gmra.mxu3 %v1345_v22 }
 0x30c   :  { %v1358_v7 = vpop.permute.xlu0 %1357 }
 0x30d   :  { %v1360_v9 = vperm.slane %v1358_v7, 0 }
 0x360   :  { %v1370_v38 = vpop.f32.mrf.mxu3 }
 0x361   :  { %v1371_v60 = vadd.f32 %v1370_v38, %v1360_v9 }
 0x363   :  { %1374 = vst [vmem:[#allocation11] sm:$0x1] %v1371_v60 }
 0x364   :  { %1385 = dma.vmem_to_hbm [thread:$0]  %s1381_s13, 16, %s1383_s16, [#allocation5]  }
 0x368   :  { %v1372_v20 = vpop.f32.mrf.mxu3 }
 0x369   :  { %1884 = dma.done.wait [#allocation5], 16  }
 0x36a   :  { %1885 = vsyncadd [#allocation5], 4294967280 }
 0x36b   :  { %1390 = vsyncpa [#allocation4], 1 }
 0x36c   :  { %1391 = vsyncpa [#allocation7], 1 }
 0x36d   :  { %1392 = vsyncpa [#allocation10], 1 }
 0x36e   :  { %1393 = vsyncpa [#allocation5], 1 }

</bundles_post_ra>
